<compile_context>
chip_gen: v6e
topology: v6e:2x2x1
jax: 0.10.0
libtpu: 0.0.40
codegen_flags: <defaults>
</compile_context>

<pallas_src>
import math
from functools import partial

import jax
import jax.numpy as jnp
from jax.experimental import pallas as pl
from jax.experimental.pallas import tpu as pltpu

LN_EPS = 1e-5  # torch.nn.LayerNorm default eps

# Single-buffer the weight operands (constant index maps -> double buffering only
# doubles footprint).  Auto-disabled if this JAX version rejects pipeline_mode.
_SINGLE_BUFFER_WEIGHTS = True


# ----------------------------- in-kernel math (f32) --------------------------

def _layernorm(x, gamma, beta):
    mu = jnp.mean(x, axis=-1, keepdims=True)
    var = jnp.mean((x - mu) ** 2, axis=-1, keepdims=True)
    return (x - mu) * jax.lax.rsqrt(var + LN_EPS) * gamma + beta


_GELU_C = math.sqrt(2.0 / math.pi)


def _gelu_tanh(x):
    # tanh-approximation GELU: the transcendental lands on the otherwise idle EUP
    # slot during the surrounding MXU matmuls (per perf review).
    # TODO(synk): torch.nn.GELU() default is the exact erf form (max abs deviation
    # ~3e-3); swap in jax.lax.erf here if bit parity with torch is required.
    return 0.5 * x * (1.0 + jnp.tanh(_GELU_C * (x + 0.044715 * x * x * x)))


# ------------------------------- layer kernel --------------------------------

def layer_kernel(x_ref,
                 ag_ref, ab_ref, wqkv_ref, wout_ref,
                 fg_ref, fb_ref, w1_ref, b1_ref, w2_ref, b2_ref,
                 lng_ref, lnb_ref,
                 o_ref,
                 q_cache, k_cache, v_cache,
                 *, heads, dim_head, n_true, apply_final_ln):
    """One transformer layer for one (batch, query-tile) grid step:
         x1  = x + Attn(LN(x));   out = x1 + MLP(LN(x1))   [+ fused final LN]
       Q/K/V for the whole sequence are computed once per batch (t == 0) and cached
       head-major in VMEM scratch; every query tile then runs a flash-style online
       softmax over KV chunks of that cache."""
    n_pad = x_ref.shape[1]
    tq = o_ref.shape[1]
    tk = tq                                     # KV chunk size == query tile size
    inner = heads * dim_head
    t = pl.program_id(1)

    # --------- per-batch cache fill: LN(x) -> fused QKV matmul (once) --------
    @pl.when(t == 0)
    def _fill():
        xn = _layernorm(x_ref[0].astype(jnp.float32), ag_ref[...], ab_ref[...])
        qkv = jnp.dot(xn.astype(jnp.bfloat16), wqkv_ref[...],
                      preferred_element_type=jnp.float32)        # (n_pad, 3*inner)
        scale = dim_head ** -0.5
        # Static per-head lane slices -> head-major caches.  Runs once per batch
        # (not per tile); avoids an in-kernel (N, H, dh) <-> (H, N, dh) relayout.
        for hh in range(heads):
            s = hh * dim_head
            q_cache[hh] = (qkv[:, s:s + dim_head] * scale).astype(jnp.bfloat16)
            k_cache[hh] = qkv[:, inner + s:inner + s + dim_head].astype(jnp.bfloat16)
            v_cache[hh] = qkv[:, 2 * inner + s:2 * inner + s + dim_head].astype(jnp.bfloat16)

    # --------------------- attention for this query tile ---------------------
    q_start = pl.multiple_of(t * tq, tq)
    q_t = q_cache[:, pl.ds(q_start, tq), :]                      # (H, TQ, dh) bf16
    x_q = x_ref[0, pl.ds(q_start, tq), :].astype(jnp.float32)    # residual rows

    n_chunks = n_pad // tk
    m0 = jnp.full((heads, tq, 1), -jnp.inf, jnp.float32)
    l0 = jnp.zeros((heads, tq, 1), jnp.float32)
    a0 = jnp.zeros((heads, tq, dim_head), jnp.float32)

    def kv_step(c, carry):
        m_i, l_i, acc = carry
        k_start = c * tk
        if not isinstance(k_start, int):
            k_start = pl.multiple_of(k_start, tk)
        k_c = k_cache[:, pl.ds(k_start, tk), :]                  # (H, TK, dh) bf16
        v_c = v_cache[:, pl.ds(k_start, tk), :]
        dots = jnp.einsum('hqd,hkd->hqk', q_t, k_c,
                          preferred_element_type=jnp.float32)    # (H, TQ, TK) f32
        if n_true != n_pad:                                      # mask padded keys
            kidx = k_start + jax.lax.broadcasted_iota(jnp.int32, (1, 1, tk), 2)
            dots = jnp.where(kidx < n_true, dots, -1e30)
        m_new = jnp.maximum(m_i, jnp.max(dots, axis=-1, keepdims=True))
        alpha = jnp.exp(m_i - m_new)
        p = jnp.exp(dots - m_new)                                # f32 exp (parity)
        l_new = alpha * l_i + jnp.sum(p, axis=-1, keepdims=True)
        acc_new = alpha * acc + jnp.einsum('hqk,hkd->hqd', p.astype(jnp.bfloat16),
                                           v_c, preferred_element_type=jnp.float32)
        return m_new, l_new, acc_new

    if n_chunks == 1:
        m_i, l_i, acc = kv_step(0, (m0, l0, a0))
    else:
        m_i, l_i, acc = jax.lax.fori_loop(0, n_chunks, kv_step, (m0, l0, a0),
                                          unroll=n_chunks <= 8)

    ctx = acc * pl.reciprocal(l_i, approx=True)                  # (H, TQ, dh) f32
    # 'h q d -> q (h d)': static per-head concat along the lane dim (no 3-D transpose).
    ctx2d = jnp.concatenate([ctx[hh] for hh in range(heads)], axis=-1)  # (TQ, inner)
    attn_out = jnp.dot(ctx2d.astype(jnp.bfloat16), wout_ref[...],
                       preferred_element_type=jnp.float32)       # (TQ, D)
    x1 = attn_out + x_q                                          # residual (f32)

    # ------------------------- FeedForward (pre-LN) --------------------------
    xn2 = _layernorm(x1, fg_ref[...], fb_ref[...])
    h = jnp.dot(xn2.astype(jnp.bfloat16), w1_ref[...],
                preferred_element_type=jnp.float32) + b1_ref[...]
    h = _gelu_tanh(h)
    y = jnp.dot(h.astype(jnp.bfloat16), w2_ref[...],
                preferred_element_type=jnp.float32) + b2_ref[...]
    out = y + x1                                                 # residual (f32)

    if apply_final_ln:                                           # fused final LayerNorm
        out = _layernorm(out, lng_ref[...], lnb_ref[...])
    if n_true != n_pad:                                          # keep padded rows zero
        ridx = q_start + jax.lax.broadcasted_iota(jnp.int32, (tq, 1), 0)
        out = jnp.where(ridx < n_true, out, 0.0)
    o_ref[0] = out.astype(o_ref.dtype)


# ------------------------------ pallas wrappers -------------------------------

def _round_up(v, m):
    return -(-v // m) * m


def _rep_spec(shape, single_buffer):
    """Full-array block with a constant index map (weights stay VMEM-resident)."""
    nd = len(shape)
    idx = lambda *_, _nd=nd: (0,) * _nd
    if single_buffer:
        # Constant index map -> no re-DMA needed; single-buffering halves the
        # weights' VMEM footprint (matters on v7x's 64 MiB VMEM).
        return pl.BlockSpec(shape, idx, pipeline_mode=pl.Buffered(1))
    return pl.BlockSpec(shape, idx)


def _vmem_capacity_bytes():
    try:
        cap = getattr(pltpu.get_tpu_info(), "vmem_capacity_bytes", None)
        if cap:
            return int(cap)
    except Exception:
        pass
    return 64 * 1024 * 1024        # conservative fallback (v7x-sized)


def _choose_seq_tile(n, vmem_cap):
    """Returns (padded_seq_len, tile).  Tile is a multiple of 8, or the full seq."""
    t_max = 256 if vmem_cap <= 64 * 1024 * 1024 else 512   # v7x vs v5e/v6e
    for t in (512, 256, 128):
        if t <= t_max and n > t:
            return _round_up(n, t), t
    n_pad = max(_round_up(n, 8), 8)
    return n_pad, n_pad


def run_layer(x, p, lng, lnb, *, heads, dim_head, n_true, apply_final_ln,
              seq_tile, vmem_limit):
    global _SINGLE_BUFFER_WEIGHTS
    B, n_pad, D = x.shape
    n_tiles = n_pad // seq_tile
    kern = partial(layer_kernel, heads=heads, dim_head=dim_head,
                   n_true=n_true, apply_final_ln=apply_final_ln)
    weights = (p["ag"], p["ab"], p["wqkv"], p["wout"],
               p["fg"], p["fb"], p["w1"], p["b1"], p["w2"], p["b2"],
               lng, lnb)

    def call(single_buffer):
        return pl.pallas_call(
            kern,
            out_shape=jax.ShapeDtypeStruct((B, n_pad, D), x.dtype),
            grid=(B, n_tiles),
            in_specs=[pl.BlockSpec((1, n_pad, D), lambda b, t: (b, 0, 0))]   # per-batch resident
                     + [_rep_spec(w.shape, single_buffer) for w in weights],
            out_specs=pl.BlockSpec((1, seq_tile, D), lambda b, t: (b, t, 0)),
            scratch_shapes=[pltpu.VMEM((heads, n_pad, dim_head), jnp.bfloat16)
                            for _ in range(3)],                              # Q/K/V caches
            compiler_params=pltpu.CompilerParams(
                # Batch axis leads and is "parallel" (v7x megacore sharding); the
                # sequence-tile axis must be "arbitrary" so the Q/K/V cache filled
                # at t == 0 is visible to every later tile of the same batch row.
                dimension_semantics=("parallel", "arbitrary"),
                vmem_limit_bytes=vmem_limit),
        )(x, *weights)

    if _SINGLE_BUFFER_WEIGHTS:
        try:
            return call(True)
        except Exception:
            _SINGLE_BUFFER_WEIGHTS = False   # pipeline_mode / Buffered(1) unsupported
    return call(False)


def transformer_forward(x, layers, final_ln, *, heads, dim_head):
    assert layers, "depth must be >= 1"
    B, N, D = x.shape
    cap = _vmem_capacity_bytes()
    vmem_limit = min((cap * 3) // 4, 96 * 1024 * 1024)   # headroom for compiler scratch
    n_pad, seq_tile = _choose_seq_tile(N, cap)
    if n_pad != N:
        x = jnp.pad(x, ((0, 0), (0, n_pad - N), (0, 0)))
    for i, p in enumerate(layers):
        x = run_layer(x, p, final_ln["g"], final_ln["b"],
                      heads=heads, dim_head=dim_head, n_true=N,
                      apply_final_ln=(i == len(layers) - 1),   # final LN fused here
                      seq_tile=seq_tile, vmem_limit=vmem_limit)
    if n_pad != N:
        x = x[:, :N, :]
    return x


# ----------------------------- parameter setup -------------------------------

def init_transformer_params(key, dim, depth, heads, dim_head, mlp_dim):
    inner = heads * dim_head
    layers = []
    for _ in range(depth):
        key, k0, k1, k2, k3, k4, k5 = jax.random.split(key, 7)
        layers.append(dict(
            ag=jnp.ones((1, dim), jnp.float32),
            ab=jnp.zeros((1, dim), jnp.float32),
            # nn.Linear(dim, 3*inner, bias=False), kept fused as one (D, 3*inner)
            wqkv=(jax.random.normal(k0, (dim, 3 * inner), jnp.float32) * 0.02
                  ).astype(jnp.bfloat16),
            wout=(jax.random.normal(k1, (inner, dim), jnp.float32) * 0.02
                  ).astype(jnp.bfloat16),
            fg=jnp.ones((1, dim), jnp.float32),
            fb=jnp.zeros((1, dim), jnp.float32),
            w1=(jax.random.normal(k2, (dim, mlp_dim), jnp.float32) * 0.02
                ).astype(jnp.bfloat16),
            b1=jax.random.normal(k3, (1, mlp_dim), jnp.float32) * 0.02,
            w2=(jax.random.normal(k4, (mlp_dim, dim), jnp.float32) * 0.02
                ).astype(jnp.bfloat16),
            b2=jax.random.normal(k5, (1, dim), jnp.float32) * 0.02,
        ))
    final_ln = dict(g=jnp.ones((1, dim), jnp.float32),
                    b=jnp.zeros((1, dim), jnp.float32))
    return layers, final_ln


# ------------------------- pure-JAX reference (f32) --------------------------

def _reference_forward(x, layers, final_ln, *, heads, dim_head):
    def ln(z, g, b):
        mu = z.mean(-1, keepdims=True)
        var = ((z - mu) ** 2).mean(-1, keepdims=True)
        return (z - mu) * jax.lax.rsqrt(var + LN_EPS) * g + b

    B, N, _ = x.shape
    inner = heads * dim_head
    scale = dim_head ** -0.5
    for p in layers:
        z = ln(x, p["ag"], p["ab"])
        qkv = z @ p["wqkv"].astype(jnp.float32)
        q, k, v = jnp.split(qkv, 3, axis=-1)

        def split_heads(m):
            return m.reshape(B, N, heads, dim_head).transpose(0, 2, 1, 3)

        q, k, v = split_heads(q), split_heads(k), split_heads(v)
        dots = jnp.einsum('bhqd,bhkd->bhqk', q, k) * scale
        attn = jax.nn.softmax(dots, axis=-1)
        o = jnp.einsum('bhqk,bhkd->bhqd', attn, v)
        o = o.transpose(0, 2, 1, 3).reshape(B, N, inner)
        x = o @ p["wout"].astype(jnp.float32) + x
        z = ln(x, p["fg"], p["fb"])
        h = z @ p["w1"].astype(jnp.float32) + p["b1"]
        h = 0.5 * h * (1.0 + jax.lax.erf(h / jnp.sqrt(2.0)))       # exact GELU
        x = h @ p["w2"].astype(jnp.float32) + p["b2"] + x
    return ln(x, final_ln["g"], final_ln["b"])


# ----------------------------------- main -------------------------------------

if __name__ == "__main__":
    # Small shapes consistent with Transformer(dim, depth, heads, dim_head, mlp_dim).
    B, N = 2, 8
    dim, depth, heads, dim_head, mlp_dim = 32, 2, 2, 8, 64

    key = jax.random.PRNGKey(0)
    kx, kx2, kp = jax.random.split(key, 3)
    layers, final_ln = init_transformer_params(kp, dim, depth, heads, dim_head, mlp_dim)

    # Main config.
    x = jax.random.normal(kx, (B, N, dim), jnp.float32)
    out = jax.block_until_ready(
        transformer_forward(x, layers, final_ln, heads=heads, dim_head=dim_head))
    assert out.shape == (B, N, dim) and out.dtype == jnp.float32
    ref = _reference_forward(x, layers, final_ln, heads=heads, dim_head=dim_head)
    err = float(jnp.max(jnp.abs(out - ref)))
    assert err < 1e-1, f"max |err| = {err}"

    # Non-multiple-of-8 sequence length exercises the pad + key-mask path.
    x2 = jax.random.normal(kx2, (B, 12, dim), jnp.float32)
    out2 = jax.block_until_ready(
        transformer_forward(x2, layers, final_ln, heads=heads, dim_head=dim_head))
    ref2 = _reference_forward(x2, layers, final_ln, heads=heads, dim_head=dim_head)
    err2 = float(jnp.max(jnp.abs(out2 - ref2)))
    assert out2.shape == (B, 12, dim) and err2 < 1e-1, f"max |err| = {err2}"

    print("KERNEL_OK")
</pallas_src>

<mosaic_0001>
module attributes {stable_mosaic.version = 11 : i64} {
  func.func @layer_kernel(%arg0: i32, %arg1: i32, %arg2: memref<1x8x32xf32, #tpu.memory_space<vmem>>, %arg3: memref<1x32xf32, #tpu.memory_space<vmem>>, %arg4: memref<1x32xf32, #tpu.memory_space<vmem>>, %arg5: memref<32x48xbf16, #tpu.memory_space<vmem>>, %arg6: memref<16x32xbf16, #tpu.memory_space<vmem>>, %arg7: memref<1x32xf32, #tpu.memory_space<vmem>>, %arg8: memref<1x32xf32, #tpu.memory_space<vmem>>, %arg9: memref<32x64xbf16, #tpu.memory_space<vmem>>, %arg10: memref<1x64xf32, #tpu.memory_space<vmem>>, %arg11: memref<64x32xbf16, #tpu.memory_space<vmem>>, %arg12: memref<1x32xf32, #tpu.memory_space<vmem>>, %arg13: memref<1x32xf32, #tpu.memory_space<vmem>>, %arg14: memref<1x32xf32, #tpu.memory_space<vmem>>, %arg15: memref<1x8x32xf32, #tpu.memory_space<vmem>>, %arg16: memref<2x8x8xbf16, #tpu.memory_space<vmem>>, %arg17: memref<2x8x8xbf16, #tpu.memory_space<vmem>>, %arg18: memref<2x8x8xbf16, #tpu.memory_space<vmem>>) attributes {dimension_semantics = [#tpu.dimension_semantics<parallel>, #tpu.dimension_semantics<arbitrary>], iteration_bounds = array<i64: 2, 1>, scalar_prefetch = 0 : i64, scratch_operands = 3 : i64, tpu.core_type = #tpu.core_type<tc>, window_params = [{transform_indices = @transform_0, window_bounds = array<i64: 1, 8, 32>}, {pipeline_mode = #tpu.pipeline_mode<synchronous>, transform_indices = @transform_1, window_bounds = array<i64: 1, 32>}, {pipeline_mode = #tpu.pipeline_mode<synchronous>, transform_indices = @transform_2, window_bounds = array<i64: 1, 32>}, {pipeline_mode = #tpu.pipeline_mode<synchronous>, transform_indices = @transform_3, window_bounds = array<i64: 32, 48>}, {pipeline_mode = #tpu.pipeline_mode<synchronous>, transform_indices = @transform_4, window_bounds = array<i64: 16, 32>}, {pipeline_mode = #tpu.pipeline_mode<synchronous>, transform_indices = @transform_5, window_bounds = array<i64: 1, 32>}, {pipeline_mode = #tpu.pipeline_mode<synchronous>, transform_indices = @transform_6, window_bounds = array<i64: 1, 32>}, {pipeline_mode = #tpu.pipeline_mode<synchronous>, transform_indices = @transform_7, window_bounds = array<i64: 32, 64>}, {pipeline_mode = #tpu.pipeline_mode<synchronous>, transform_indices = @transform_8, window_bounds = array<i64: 1, 64>}, {pipeline_mode = #tpu.pipeline_mode<synchronous>, transform_indices = @transform_9, window_bounds = array<i64: 64, 32>}, {pipeline_mode = #tpu.pipeline_mode<synchronous>, transform_indices = @transform_10, window_bounds = array<i64: 1, 32>}, {pipeline_mode = #tpu.pipeline_mode<synchronous>, transform_indices = @transform_11, window_bounds = array<i64: 1, 32>}, {pipeline_mode = #tpu.pipeline_mode<synchronous>, transform_indices = @transform_12, window_bounds = array<i64: 1, 32>}, {transform_indices = @transform_13, window_bounds = array<i64: 1, 8, 32>}]} {
    %c0_i32 = arith.constant 0 : i32
    %0 = arith.cmpi eq, %arg1, %c0_i32 : i32
    %1 = arith.extui %0 : i1 to i32
    %c0_i32_0 = arith.constant 0 : i32
    %2 = arith.cmpi ne, %1, %c0_i32_0 : i32
    scf.if %2 {
      %c0_45 = arith.constant 0 : index
      %c0_46 = arith.constant 0 : index
      %c0_47 = arith.constant 0 : index
      %98 = vector.load %arg2[%c0_45, %c0_46, %c0_47] : memref<1x8x32xf32, #tpu.memory_space<vmem>>, vector<1x8x32xf32>
      %99 = vector.shape_cast %98 : vector<1x8x32xf32> to vector<8x32xf32>
      %c0_48 = arith.constant 0 : index
      %c0_49 = arith.constant 0 : index
      %100 = vector.load %arg3[%c0_48, %c0_49] : memref<1x32xf32, #tpu.memory_space<vmem>>, vector<1x32xf32>
      %c0_50 = arith.constant 0 : index
      %c0_51 = arith.constant 0 : index
      %101 = vector.load %arg4[%c0_50, %c0_51] : memref<1x32xf32, #tpu.memory_space<vmem>>, vector<1x32xf32>
      %cst_52 = arith.constant dense<0.000000e+00> : vector<8xf32>
      %102 = vector.multi_reduction <add>, %99, %cst_52 [1] : vector<8x32xf32> to vector<8xf32>
      %103 = vector.shape_cast %102 : vector<8xf32> to vector<8x1xf32>
      %cst_53 = arith.constant 3.200000e+01 : f32
      %104 = vector.broadcast %cst_53 : f32 to vector<8x1xf32>
      %105 = arith.divf %103, %104 : vector<8x1xf32>
      %106 = vector.broadcast %105 : vector<8x1xf32> to vector<8x32xf32>
      %107 = arith.subf %99, %106 : vector<8x32xf32>
      %108 = arith.mulf %107, %107 : vector<8x32xf32>
      %cst_54 = arith.constant dense<0.000000e+00> : vector<8xf32>
      %109 = vector.multi_reduction <add>, %108, %cst_54 [1] : vector<8x32xf32> to vector<8xf32>
      %110 = vector.shape_cast %109 : vector<8xf32> to vector<8x1xf32>
      %cst_55 = arith.constant 3.200000e+01 : f32
      %111 = vector.broadcast %cst_55 : f32 to vector<8x1xf32>
      %112 = arith.divf %110, %111 : vector<8x1xf32>
      %113 = vector.broadcast %105 : vector<8x1xf32> to vector<8x32xf32>
      %114 = arith.subf %99, %113 : vector<8x32xf32>
      %cst_56 = arith.constant 9.99999974E-6 : f32
      %115 = vector.broadcast %cst_56 : f32 to vector<8x1xf32>
      %116 = arith.addf %112, %115 : vector<8x1xf32>
      %117 = math.rsqrt %116 : vector<8x1xf32>
      %118 = vector.broadcast %117 : vector<8x1xf32> to vector<8x32xf32>
      %119 = arith.mulf %114, %118 : vector<8x32xf32>
      %120 = vector.broadcast %100 : vector<1x32xf32> to vector<8x32xf32>
      %121 = arith.mulf %119, %120 : vector<8x32xf32>
      %122 = vector.broadcast %101 : vector<1x32xf32> to vector<8x32xf32>
      %123 = arith.addf %121, %122 : vector<8x32xf32>
      %124 = arith.truncf %123 : vector<8x32xf32> to vector<8x32xbf16>
      %c0_57 = arith.constant 0 : index
      %c0_58 = arith.constant 0 : index
      %125 = vector.load %arg5[%c0_57, %c0_58] : memref<32x48xbf16, #tpu.memory_space<vmem>>, vector<32x48xbf16>
      %cst_59 = arith.constant dense<0.000000e+00> : vector<8x48xf32>
      %126 = tpu.matmul %124, %125, %cst_59 {dimension_numbers = #tpu.dot_dimension_numbers<[1], [0], [0], [1], [0, 0, 1, 1], [], []>} : vector<8x32xbf16>, vector<32x48xbf16>, vector<8x48xf32> -> vector<8x48xf32>
      %127 = vector.extract_strided_slice %126 {offsets = [0, 0], sizes = [8, 8], strides = [1, 1]} : vector<8x48xf32> to vector<8x8xf32>
      %cst_60 = arith.constant 0.353553385 : f32
      %128 = vector.broadcast %cst_60 : f32 to vector<8x8xf32>
      %129 = arith.mulf %127, %128 : vector<8x8xf32>
      %130 = arith.truncf %129 : vector<8x8xf32> to vector<8x8xbf16>
      %c0_61 = arith.constant 0 : index
      %c0_62 = arith.constant 0 : index
      %c0_63 = arith.constant 0 : index
      %131 = vector.load %arg16[%c0_61, %c0_62, %c0_63] : memref<2x8x8xbf16, #tpu.memory_space<vmem>>, vector<1x8x8xbf16>
      %132 = vector.shape_cast %131 : vector<1x8x8xbf16> to vector<8x8xbf16>
      %133 = vector.shape_cast %130 : vector<8x8xbf16> to vector<1x8x8xbf16>
      tpu.vector_store %arg16[%c0_61, %c0_62, %c0_63], %133 {strides = array<i32>} : memref<2x8x8xbf16, #tpu.memory_space<vmem>>, vector<1x8x8xbf16>,
      %134 = vector.extract_strided_slice %126 {offsets = [0, 16], sizes = [8, 8], strides = [1, 1]} : vector<8x48xf32> to vector<8x8xf32>
      %135 = arith.truncf %134 : vector<8x8xf32> to vector<8x8xbf16>
      %c0_64 = arith.constant 0 : index
      %c0_65 = arith.constant 0 : index
      %c0_66 = arith.constant 0 : index
      %136 = vector.load %arg17[%c0_64, %c0_65, %c0_66] : memref<2x8x8xbf16, #tpu.memory_space<vmem>>, vector<1x8x8xbf16>
      %137 = vector.shape_cast %136 : vector<1x8x8xbf16> to vector<8x8xbf16>
      %138 = vector.shape_cast %135 : vector<8x8xbf16> to vector<1x8x8xbf16>
      tpu.vector_store %arg17[%c0_64, %c0_65, %c0_66], %138 {strides = array<i32>} : memref<2x8x8xbf16, #tpu.memory_space<vmem>>, vector<1x8x8xbf16>,
      %139 = vector.extract_strided_slice %126 {offsets = [0, 32], sizes = [8, 8], strides = [1, 1]} : vector<8x48xf32> to vector<8x8xf32>
      %140 = arith.truncf %139 : vector<8x8xf32> to vector<8x8xbf16>
      %c0_67 = arith.constant 0 : index
      %c0_68 = arith.constant 0 : index
      %c0_69 = arith.constant 0 : index
      %141 = vector.load %arg18[%c0_67, %c0_68, %c0_69] : memref<2x8x8xbf16, #tpu.memory_space<vmem>>, vector<1x8x8xbf16>
      %142 = vector.shape_cast %141 : vector<1x8x8xbf16> to vector<8x8xbf16>
      %143 = vector.shape_cast %140 : vector<8x8xbf16> to vector<1x8x8xbf16>
      tpu.vector_store %arg18[%c0_67, %c0_68, %c0_69], %143 {strides = array<i32>} : memref<2x8x8xbf16, #tpu.memory_space<vmem>>, vector<1x8x8xbf16>,
      %144 = vector.extract_strided_slice %126 {offsets = [0, 8], sizes = [8, 8], strides = [1, 1]} : vector<8x48xf32> to vector<8x8xf32>
      %cst_70 = arith.constant 0.353553385 : f32
      %145 = vector.broadcast %cst_70 : f32 to vector<8x8xf32>
      %146 = arith.mulf %144, %145 : vector<8x8xf32>
      %147 = arith.truncf %146 : vector<8x8xf32> to vector<8x8xbf16>
      %c1 = arith.constant 1 : index
      %c0_71 = arith.constant 0 : index
      %c0_72 = arith.constant 0 : index
      %148 = vector.load %arg16[%c1, %c0_71, %c0_72] : memref<2x8x8xbf16, #tpu.memory_space<vmem>>, vector<1x8x8xbf16>
      %149 = vector.shape_cast %148 : vector<1x8x8xbf16> to vector<8x8xbf16>
      %150 = vector.shape_cast %147 : vector<8x8xbf16> to vector<1x8x8xbf16>
      tpu.vector_store %arg16[%c1, %c0_71, %c0_72], %150 {strides = array<i32>} : memref<2x8x8xbf16, #tpu.memory_space<vmem>>, vector<1x8x8xbf16>,
      %151 = vector.extract_strided_slice %126 {offsets = [0, 24], sizes = [8, 8], strides = [1, 1]} : vector<8x48xf32> to vector<8x8xf32>
      %152 = arith.truncf %151 : vector<8x8xf32> to vector<8x8xbf16>
      %c1_73 = arith.constant 1 : index
      %c0_74 = arith.constant 0 : index
      %c0_75 = arith.constant 0 : index
      %153 = vector.load %arg17[%c1_73, %c0_74, %c0_75] : memref<2x8x8xbf16, #tpu.memory_space<vmem>>, vector<1x8x8xbf16>
      %154 = vector.shape_cast %153 : vector<1x8x8xbf16> to vector<8x8xbf16>
      %155 = vector.shape_cast %152 : vector<8x8xbf16> to vector<1x8x8xbf16>
      tpu.vector_store %arg17[%c1_73, %c0_74, %c0_75], %155 {strides = array<i32>} : memref<2x8x8xbf16, #tpu.memory_space<vmem>>, vector<1x8x8xbf16>,
      %156 = vector.extract_strided_slice %126 {offsets = [0, 40], sizes = [8, 8], strides = [1, 1]} : vector<8x48xf32> to vector<8x8xf32>
      %157 = arith.truncf %156 : vector<8x8xf32> to vector<8x8xbf16>
      %c1_76 = arith.constant 1 : index
      %c0_77 = arith.constant 0 : index
      %c0_78 = arith.constant 0 : index
      %158 = vector.load %arg18[%c1_76, %c0_77, %c0_78] : memref<2x8x8xbf16, #tpu.memory_space<vmem>>, vector<1x8x8xbf16>
      %159 = vector.shape_cast %158 : vector<1x8x8xbf16> to vector<8x8xbf16>
      %160 = vector.shape_cast %157 : vector<8x8xbf16> to vector<1x8x8xbf16>
      tpu.vector_store %arg18[%c1_76, %c0_77, %c0_78], %160 {strides = array<i32>} : memref<2x8x8xbf16, #tpu.memory_space<vmem>>, vector<1x8x8xbf16>,
    } else {
    }
    %c8_i32 = arith.constant 8 : i32
    %3 = arith.muli %arg1, %c8_i32 : i32
    %4 = tpu.assume_multiple %3, 8 : i32
    %c0 = arith.constant 0 : index
    %5 = arith.index_cast %4 : i32 to index
    %c0_1 = arith.constant 0 : index
    %6 = vector.load %arg16[%c0, %5, %c0_1] : memref<2x8x8xbf16, #tpu.memory_space<vmem>>, vector<2x8x8xbf16>
    %c0_2 = arith.constant 0 : index
    %7 = arith.index_cast %4 : i32 to index
    %c0_3 = arith.constant 0 : index
    %8 = vector.load %arg2[%c0_2, %7, %c0_3] : memref<1x8x32xf32, #tpu.memory_space<vmem>>, vector<1x8x32xf32>
    %9 = vector.shape_cast %8 : vector<1x8x32xf32> to vector<8x32xf32>
    %cst = arith.constant 0xFF800000 : f32
    %10 = vector.broadcast %cst : f32 to vector<2x8x1xf32>
    %cst_4 = arith.constant 0.000000e+00 : f32
    %11 = vector.broadcast %cst_4 : f32 to vector<2x8x1xf32>
    %cst_5 = arith.constant 0.000000e+00 : f32
    %12 = vector.broadcast %cst_5 : f32 to vector<2x8x8xf32>
    %c0_6 = arith.constant 0 : index
    %c0_7 = arith.constant 0 : index
    %c0_8 = arith.constant 0 : index
    %13 = vector.load %arg17[%c0_6, %c0_7, %c0_8] : memref<2x8x8xbf16, #tpu.memory_space<vmem>>, vector<2x8x8xbf16>
    %c0_9 = arith.constant 0 : index
    %c0_10 = arith.constant 0 : index
    %c0_11 = arith.constant 0 : index
    %14 = vector.load %arg18[%c0_9, %c0_10, %c0_11] : memref<2x8x8xbf16, #tpu.memory_space<vmem>>, vector<2x8x8xbf16>
    "tpu.trace_start"() <{level = 10 : i32, message = "hqd,hkd->hqk"}> : () -> ()
    %cst_12 = arith.constant dense<0.000000e+00> : vector<2x8x8xf32>
    %15 = tpu.matmul %6, %13, %cst_12 {dimension_numbers = #tpu.dot_dimension_numbers<[2], [2], [1], [1], [0, 0, 0, 1, 1, 1], [0], [0]>} : vector<2x8x8xbf16>, vector<2x8x8xbf16>, vector<2x8x8xf32> -> vector<2x8x8xf32>
    "tpu.trace_stop"() : () -> ()
    %cst_13 = arith.constant dense<0xFF800000> : vector<2x8xf32>
    %16 = vector.multi_reduction <maximumf>, %15, %cst_13 [2] : vector<2x8x8xf32> to vector<2x8xf32>
    %17 = vector.shape_cast %16 : vector<2x8xf32> to vector<2x8x1xf32>
    %18 = arith.maximumf %10, %17 : vector<2x8x1xf32>
    %19 = arith.subf %10, %18 : vector<2x8x1xf32>
    %20 = math.exp %19 : vector<2x8x1xf32>
    %21 = vector.broadcast %18 : vector<2x8x1xf32> to vector<2x8x8xf32>
    %22 = arith.subf %15, %21 : vector<2x8x8xf32>
    %23 = math.exp %22 : vector<2x8x8xf32>
    %24 = arith.mulf %20, %11 : vector<2x8x1xf32>
    %cst_14 = arith.constant dense<0.000000e+00> : vector<2x8xf32>
    %25 = vector.multi_reduction <add>, %23, %cst_14 [2] : vector<2x8x8xf32> to vector<2x8xf32>
    %26 = vector.shape_cast %25 : vector<2x8xf32> to vector<2x8x1xf32>
    %27 = arith.addf %24, %26 : vector<2x8x1xf32>
    %28 = vector.broadcast %20 : vector<2x8x1xf32> to vector<2x8x8xf32>
    %29 = arith.mulf %28, %12 : vector<2x8x8xf32>
    %30 = arith.truncf %23 : vector<2x8x8xf32> to vector<2x8x8xbf16>
    "tpu.trace_start"() <{level = 10 : i32, message = "hqk,hkd->hqd"}> : () -> ()
    %cst_15 = arith.constant dense<0.000000e+00> : vector<2x8x8xf32>
    %31 = tpu.matmul %30, %14, %cst_15 {dimension_numbers = #tpu.dot_dimension_numbers<[2], [1], [1], [2], [0, 0, 0, 1, 1, 2], [0], [0]>} : vector<2x8x8xbf16>, vector<2x8x8xbf16>, vector<2x8x8xf32> -> vector<2x8x8xf32>
    "tpu.trace_stop"() : () -> ()
    %32 = arith.addf %29, %31 : vector<2x8x8xf32>
    %33 = tpu.reciprocal %27 {approx = true} : vector<2x8x1xf32> -> vector<2x8x1xf32>
    %34 = vector.broadcast %33 : vector<2x8x1xf32> to vector<2x8x8xf32>
    %35 = arith.mulf %32, %34 : vector<2x8x8xf32>
    %36 = vector.extract_strided_slice %35 {offsets = [0, 0, 0], sizes = [1, 8, 8], strides = [1, 1, 1]} : vector<2x8x8xf32> to vector<1x8x8xf32>
    %37 = vector.shape_cast %36 : vector<1x8x8xf32> to vector<8x8xf32>
    %38 = vector.extract_strided_slice %35 {offsets = [1, 0, 0], sizes = [1, 8, 8], strides = [1, 1, 1]} : vector<2x8x8xf32> to vector<1x8x8xf32>
    %39 = vector.shape_cast %38 : vector<1x8x8xf32> to vector<8x8xf32>
    %40 = tpu.concatenate %37, %39 in 1 : vector<8x8xf32>, vector<8x8xf32> -> vector<8x16xf32>
    %41 = arith.truncf %40 : vector<8x16xf32> to vector<8x16xbf16>
    %c0_16 = arith.constant 0 : index
    %c0_17 = arith.constant 0 : index
    %42 = vector.load %arg6[%c0_16, %c0_17] : memref<16x32xbf16, #tpu.memory_space<vmem>>, vector<16x32xbf16>
    %cst_18 = arith.constant dense<0.000000e+00> : vector<8x32xf32>
    %43 = tpu.matmul %41, %42, %cst_18 {dimension_numbers = #tpu.dot_dimension_numbers<[1], [0], [0], [1], [0, 0, 1, 1], [], []>} : vector<8x16xbf16>, vector<16x32xbf16>, vector<8x32xf32> -> vector<8x32xf32>
    %44 = arith.addf %43, %9 : vector<8x32xf32>
    %c0_19 = arith.constant 0 : index
    %c0_20 = arith.constant 0 : index
    %45 = vector.load %arg7[%c0_19, %c0_20] : memref<1x32xf32, #tpu.memory_space<vmem>>, vector<1x32xf32>
    %c0_21 = arith.constant 0 : index
    %c0_22 = arith.constant 0 : index
    %46 = vector.load %arg8[%c0_21, %c0_22] : memref<1x32xf32, #tpu.memory_space<vmem>>, vector<1x32xf32>
    %cst_23 = arith.constant dense<0.000000e+00> : vector<8xf32>
    %47 = vector.multi_reduction <add>, %44, %cst_23 [1] : vector<8x32xf32> to vector<8xf32>
    %48 = vector.shape_cast %47 : vector<8xf32> to vector<8x1xf32>
    %cst_24 = arith.constant 3.200000e+01 : f32
    %49 = vector.broadcast %cst_24 : f32 to vector<8x1xf32>
    %50 = arith.divf %48, %49 : vector<8x1xf32>
    %51 = vector.broadcast %50 : vector<8x1xf32> to vector<8x32xf32>
    %52 = arith.subf %44, %51 : vector<8x32xf32>
    %53 = arith.mulf %52, %52 : vector<8x32xf32>
    %cst_25 = arith.constant dense<0.000000e+00> : vector<8xf32>
    %54 = vector.multi_reduction <add>, %53, %cst_25 [1] : vector<8x32xf32> to vector<8xf32>
    %55 = vector.shape_cast %54 : vector<8xf32> to vector<8x1xf32>
    %cst_26 = arith.constant 3.200000e+01 : f32
    %56 = vector.broadcast %cst_26 : f32 to vector<8x1xf32>
    %57 = arith.divf %55, %56 : vector<8x1xf32>
    %58 = vector.broadcast %50 : vector<8x1xf32> to vector<8x32xf32>
    %59 = arith.subf %44, %58 : vector<8x32xf32>
    %cst_27 = arith.constant 9.99999974E-6 : f32
    %60 = vector.broadcast %cst_27 : f32 to vector<8x1xf32>
    %61 = arith.addf %57, %60 : vector<8x1xf32>
    %62 = math.rsqrt %61 : vector<8x1xf32>
    %63 = vector.broadcast %62 : vector<8x1xf32> to vector<8x32xf32>
    %64 = arith.mulf %59, %63 : vector<8x32xf32>
    %65 = vector.broadcast %45 : vector<1x32xf32> to vector<8x32xf32>
    %66 = arith.mulf %64, %65 : vector<8x32xf32>
    %67 = vector.broadcast %46 : vector<1x32xf32> to vector<8x32xf32>
    %68 = arith.addf %66, %67 : vector<8x32xf32>
    %69 = arith.truncf %68 : vector<8x32xf32> to vector<8x32xbf16>
    %c0_28 = arith.constant 0 : index
    %c0_29 = arith.constant 0 : index
    %70 = vector.load %arg9[%c0_28, %c0_29] : memref<32x64xbf16, #tpu.memory_space<vmem>>, vector<32x64xbf16>
    %cst_30 = arith.constant dense<0.000000e+00> : vector<8x64xf32>
    %71 = tpu.matmul %69, %70, %cst_30 {dimension_numbers = #tpu.dot_dimension_numbers<[1], [0], [0], [1], [0, 0, 1, 1], [], []>} : vector<8x32xbf16>, vector<32x64xbf16>, vector<8x64xf32> -> vector<8x64xf32>
    %c0_31 = arith.constant 0 : index
    %c0_32 = arith.constant 0 : index
    %72 = vector.load %arg10[%c0_31, %c0_32] : memref<1x64xf32, #tpu.memory_space<vmem>>, vector<1x64xf32>
    %73 = vector.broadcast %72 : vector<1x64xf32> to vector<8x64xf32>
    %74 = arith.addf %71, %73 : vector<8x64xf32>
    %cst_33 = arith.constant 5.000000e-01 : f32
    %75 = vector.broadcast %cst_33 : f32 to vector<8x64xf32>
    %76 = arith.mulf %75, %74 : vector<8x64xf32>
    %cst_34 = arith.constant 4.471500e-02 : f32
    %77 = vector.broadcast %cst_34 : f32 to vector<8x64xf32>
    %78 = arith.mulf %77, %74 : vector<8x64xf32>
    %79 = arith.mulf %78, %74 : vector<8x64xf32>
    %80 = arith.mulf %79, %74 : vector<8x64xf32>
    %81 = arith.addf %74, %80 : vector<8x64xf32>
    %cst_35 = arith.constant 0.797884583 : f32
    %82 = vector.broadcast %cst_35 : f32 to vector<8x64xf32>
    %83 = arith.mulf %82, %81 : vector<8x64xf32>
    %84 = math.tanh %83 : vector<8x64xf32>
    %cst_36 = arith.constant 1.000000e+00 : f32
    %85 = vector.broadcast %cst_36 : f32 to vector<8x64xf32>
    %86 = arith.addf %85, %84 : vector<8x64xf32>
    %87 = arith.mulf %76, %86 : vector<8x64xf32>
    %88 = arith.truncf %87 : vector<8x64xf32> to vector<8x64xbf16>
    %c0_37 = arith.constant 0 : index
    %c0_38 = arith.constant 0 : index
    %89 = vector.load %arg11[%c0_37, %c0_38] : memref<64x32xbf16, #tpu.memory_space<vmem>>, vector<64x32xbf16>
    %cst_39 = arith.constant dense<0.000000e+00> : vector<8x32xf32>
    %90 = tpu.matmul %88, %89, %cst_39 {dimension_numbers = #tpu.dot_dimension_numbers<[1], [0], [0], [1], [0, 0, 1, 1], [], []>} : vector<8x64xbf16>, vector<64x32xbf16>, vector<8x32xf32> -> vector<8x32xf32>
    %c0_40 = arith.constant 0 : index
    %c0_41 = arith.constant 0 : index
    %91 = vector.load %arg12[%c0_40, %c0_41] : memref<1x32xf32, #tpu.memory_space<vmem>>, vector<1x32xf32>
    %92 = vector.broadcast %91 : vector<1x32xf32> to vector<8x32xf32>
    %93 = arith.addf %90, %92 : vector<8x32xf32>
    %94 = arith.addf %93, %44 : vector<8x32xf32>
    %c0_42 = arith.constant 0 : index
    %c0_43 = arith.constant 0 : index
    %c0_44 = arith.constant 0 : index
    %95 = vector.load %arg15[%c0_42, %c0_43, %c0_44] : memref<1x8x32xf32, #tpu.memory_space<vmem>>, vector<1x8x32xf32>
    %96 = vector.shape_cast %95 : vector<1x8x32xf32> to vector<8x32xf32>
    %97 = vector.shape_cast %94 : vector<8x32xf32> to vector<1x8x32xf32>
    tpu.vector_store %arg15[%c0_42, %c0_43, %c0_44], %97 {strides = array<i32>} : memref<1x8x32xf32, #tpu.memory_space<vmem>>, vector<1x8x32xf32>,
    return
  }
  func.func @transform_0(%arg0: i32, %arg1: i32) -> (i32, i32, i32) {
    %c0_i32 = arith.constant 0 : i32
    %c0_i32_0 = arith.constant 0 : i32
    %c0_i32_1 = arith.constant 0 : i32
    return %arg0, %c0_i32, %c0_i32_0 : i32, i32, i32
  }
  func.func @transform_1(%arg0: i32, %arg1: i32) -> (i32, i32) {
    %c0_i32 = arith.constant 0 : i32
    %c0_i32_0 = arith.constant 0 : i32
    %c0_i32_1 = arith.constant 0 : i32
    return %c0_i32, %c0_i32_0 : i32, i32
  }
  func.func @transform_2(%arg0: i32, %arg1: i32) -> (i32, i32) {
    %c0_i32 = arith.constant 0 : i32
    %c0_i32_0 = arith.constant 0 : i32
    %c0_i32_1 = arith.constant 0 : i32
    return %c0_i32, %c0_i32_0 : i32, i32
  }
  func.func @transform_3(%arg0: i32, %arg1: i32) -> (i32, i32) {
    %c0_i32 = arith.constant 0 : i32
    %c0_i32_0 = arith.constant 0 : i32
    %c0_i32_1 = arith.constant 0 : i32
    return %c0_i32, %c0_i32_0 : i32, i32
  }
  func.func @transform_4(%arg0: i32, %arg1: i32) -> (i32, i32) {
    %c0_i32 = arith.constant 0 : i32
    %c0_i32_0 = arith.constant 0 : i32
    %c0_i32_1 = arith.constant 0 : i32
    return %c0_i32, %c0_i32_0 : i32, i32
  }
  func.func @transform_5(%arg0: i32, %arg1: i32) -> (i32, i32) {
    %c0_i32 = arith.constant 0 : i32
    %c0_i32_0 = arith.constant 0 : i32
    %c0_i32_1 = arith.constant 0 : i32
    return %c0_i32, %c0_i32_0 : i32, i32
  }
  func.func @transform_6(%arg0: i32, %arg1: i32) -> (i32, i32) {
    %c0_i32 = arith.constant 0 : i32
    %c0_i32_0 = arith.constant 0 : i32
    %c0_i32_1 = arith.constant 0 : i32
    return %c0_i32, %c0_i32_0 : i32, i32
  }
  func.func @transform_7(%arg0: i32, %arg1: i32) -> (i32, i32) {
    %c0_i32 = arith.constant 0 : i32
    %c0_i32_0 = arith.constant 0 : i32
    %c0_i32_1 = arith.constant 0 : i32
    return %c0_i32, %c0_i32_0 : i32, i32
  }
  func.func @transform_8(%arg0: i32, %arg1: i32) -> (i32, i32) {
    %c0_i32 = arith.constant 0 : i32
    %c0_i32_0 = arith.constant 0 : i32
    %c0_i32_1 = arith.constant 0 : i32
    return %c0_i32, %c0_i32_0 : i32, i32
  }
  func.func @transform_9(%arg0: i32, %arg1: i32) -> (i32, i32) {
    %c0_i32 = arith.constant 0 : i32
    %c0_i32_0 = arith.constant 0 : i32
    %c0_i32_1 = arith.constant 0 : i32
    return %c0_i32, %c0_i32_0 : i32, i32
  }
  func.func @transform_10(%arg0: i32, %arg1: i32) -> (i32, i32) {
    %c0_i32 = arith.constant 0 : i32
    %c0_i32_0 = arith.constant 0 : i32
    %c0_i32_1 = arith.constant 0 : i32
    return %c0_i32, %c0_i32_0 : i32, i32
  }
  func.func @transform_11(%arg0: i32, %arg1: i32) -> (i32, i32) {
    %c0_i32 = arith.constant 0 : i32
    %c0_i32_0 = arith.constant 0 : i32
    %c0_i32_1 = arith.constant 0 : i32
    return %c0_i32, %c0_i32_0 : i32, i32
  }
  func.func @transform_12(%arg0: i32, %arg1: i32) -> (i32, i32) {
    %c0_i32 = arith.constant 0 : i32
    %c0_i32_0 = arith.constant 0 : i32
    %c0_i32_1 = arith.constant 0 : i32
    return %c0_i32, %c0_i32_0 : i32, i32
  }
  func.func @transform_13(%arg0: i32, %arg1: i32) -> (i32, i32, i32) {
    %c0_i32 = arith.constant 0 : i32
    %c0_i32_0 = arith.constant 0 : i32
    return %arg0, %arg1, %c0_i32 : i32, i32, i32
  }
}

module attributes {stable_mosaic.version = 11 : i64} {
  func.func @layer_kernel(%arg0: i32, %arg1: i32, %arg2: memref<1x8x32xf32, #tpu.memory_space<vmem>>, %arg3: memref<1x32xf32, #tpu.memory_space<vmem>>, %arg4: memref<1x32xf32, #tpu.memory_space<vmem>>, %arg5: memref<32x48xbf16, #tpu.memory_space<vmem>>, %arg6: memref<16x32xbf16, #tpu.memory_space<vmem>>, %arg7: memref<1x32xf32, #tpu.memory_space<vmem>>, %arg8: memref<1x32xf32, #tpu.memory_space<vmem>>, %arg9: memref<32x64xbf16, #tpu.memory_space<vmem>>, %arg10: memref<1x64xf32, #tpu.memory_space<vmem>>, %arg11: memref<64x32xbf16, #tpu.memory_space<vmem>>, %arg12: memref<1x32xf32, #tpu.memory_space<vmem>>, %arg13: memref<1x32xf32, #tpu.memory_space<vmem>>, %arg14: memref<1x32xf32, #tpu.memory_space<vmem>>, %arg15: memref<1x8x32xf32, #tpu.memory_space<vmem>>, %arg16: memref<2x8x8xbf16, #tpu.memory_space<vmem>>, %arg17: memref<2x8x8xbf16, #tpu.memory_space<vmem>>, %arg18: memref<2x8x8xbf16, #tpu.memory_space<vmem>>) attributes {dimension_semantics = [#tpu.dimension_semantics<parallel>, #tpu.dimension_semantics<arbitrary>], iteration_bounds = array<i64: 2, 1>, scalar_prefetch = 0 : i64, scratch_operands = 3 : i64, tpu.core_type = #tpu.core_type<tc>, window_params = [{transform_indices = @transform_0, window_bounds = array<i64: 1, 8, 32>}, {pipeline_mode = #tpu.pipeline_mode<synchronous>, transform_indices = @transform_1, window_bounds = array<i64: 1, 32>}, {pipeline_mode = #tpu.pipeline_mode<synchronous>, transform_indices = @transform_2, window_bounds = array<i64: 1, 32>}, {pipeline_mode = #tpu.pipeline_mode<synchronous>, transform_indices = @transform_3, window_bounds = array<i64: 32, 48>}, {pipeline_mode = #tpu.pipeline_mode<synchronous>, transform_indices = @transform_4, window_bounds = array<i64: 16, 32>}, {pipeline_mode = #tpu.pipeline_mode<synchronous>, transform_indices = @transform_5, window_bounds = array<i64: 1, 32>}, {pipeline_mode = #tpu.pipeline_mode<synchronous>, transform_indices = @transform_6, window_bounds = array<i64: 1, 32>}, {pipeline_mode = #tpu.pipeline_mode<synchronous>, transform_indices = @transform_7, window_bounds = array<i64: 32, 64>}, {pipeline_mode = #tpu.pipeline_mode<synchronous>, transform_indices = @transform_8, window_bounds = array<i64: 1, 64>}, {pipeline_mode = #tpu.pipeline_mode<synchronous>, transform_indices = @transform_9, window_bounds = array<i64: 64, 32>}, {pipeline_mode = #tpu.pipeline_mode<synchronous>, transform_indices = @transform_10, window_bounds = array<i64: 1, 32>}, {pipeline_mode = #tpu.pipeline_mode<synchronous>, transform_indices = @transform_11, window_bounds = array<i64: 1, 32>}, {pipeline_mode = #tpu.pipeline_mode<synchronous>, transform_indices = @transform_12, window_bounds = array<i64: 1, 32>}, {transform_indices = @transform_13, window_bounds = array<i64: 1, 8, 32>}]} {
    %c0_i32 = arith.constant 0 : i32
    %0 = arith.cmpi eq, %arg1, %c0_i32 : i32
    %1 = arith.extui %0 : i1 to i32
    %c0_i32_0 = arith.constant 0 : i32
    %2 = arith.cmpi ne, %1, %c0_i32_0 : i32
    scf.if %2 {
      %c0_45 = arith.constant 0 : index
      %c0_46 = arith.constant 0 : index
      %c0_47 = arith.constant 0 : index
      %98 = vector.load %arg2[%c0_45, %c0_46, %c0_47] : memref<1x8x32xf32, #tpu.memory_space<vmem>>, vector<1x8x32xf32>
      %99 = vector.shape_cast %98 : vector<1x8x32xf32> to vector<8x32xf32>
      %c0_48 = arith.constant 0 : index
      %c0_49 = arith.constant 0 : index
      %100 = vector.load %arg3[%c0_48, %c0_49] : memref<1x32xf32, #tpu.memory_space<vmem>>, vector<1x32xf32>
      %c0_50 = arith.constant 0 : index
      %c0_51 = arith.constant 0 : index
      %101 = vector.load %arg4[%c0_50, %c0_51] : memref<1x32xf32, #tpu.memory_space<vmem>>, vector<1x32xf32>
      %cst_52 = arith.constant dense<0.000000e+00> : vector<8xf32>
      %102 = vector.multi_reduction <add>, %99, %cst_52 [1] : vector<8x32xf32> to vector<8xf32>
      %103 = vector.shape_cast %102 : vector<8xf32> to vector<8x1xf32>
      %cst_53 = arith.constant 3.200000e+01 : f32
      %104 = vector.broadcast %cst_53 : f32 to vector<8x1xf32>
      %105 = arith.divf %103, %104 : vector<8x1xf32>
      %106 = vector.broadcast %105 : vector<8x1xf32> to vector<8x32xf32>
      %107 = arith.subf %99, %106 : vector<8x32xf32>
      %108 = arith.mulf %107, %107 : vector<8x32xf32>
      %cst_54 = arith.constant dense<0.000000e+00> : vector<8xf32>
      %109 = vector.multi_reduction <add>, %108, %cst_54 [1] : vector<8x32xf32> to vector<8xf32>
      %110 = vector.shape_cast %109 : vector<8xf32> to vector<8x1xf32>
      %cst_55 = arith.constant 3.200000e+01 : f32
      %111 = vector.broadcast %cst_55 : f32 to vector<8x1xf32>
      %112 = arith.divf %110, %111 : vector<8x1xf32>
      %113 = vector.broadcast %105 : vector<8x1xf32> to vector<8x32xf32>
      %114 = arith.subf %99, %113 : vector<8x32xf32>
      %cst_56 = arith.constant 9.99999974E-6 : f32
      %115 = vector.broadcast %cst_56 : f32 to vector<8x1xf32>
      %116 = arith.addf %112, %115 : vector<8x1xf32>
      %117 = math.rsqrt %116 : vector<8x1xf32>
      %118 = vector.broadcast %117 : vector<8x1xf32> to vector<8x32xf32>
      %119 = arith.mulf %114, %118 : vector<8x32xf32>
      %120 = vector.broadcast %100 : vector<1x32xf32> to vector<8x32xf32>
      %121 = arith.mulf %119, %120 : vector<8x32xf32>
      %122 = vector.broadcast %101 : vector<1x32xf32> to vector<8x32xf32>
      %123 = arith.addf %121, %122 : vector<8x32xf32>
      %124 = arith.truncf %123 : vector<8x32xf32> to vector<8x32xbf16>
      %c0_57 = arith.constant 0 : index
      %c0_58 = arith.constant 0 : index
      %125 = vector.load %arg5[%c0_57, %c0_58] : memref<32x48xbf16, #tpu.memory_space<vmem>>, vector<32x48xbf16>
      %cst_59 = arith.constant dense<0.000000e+00> : vector<8x48xf32>
      %126 = tpu.matmul %124, %125, %cst_59 {dimension_numbers = #tpu.dot_dimension_numbers<[1], [0], [0], [1], [0, 0, 1, 1], [], []>} : vector<8x32xbf16>, vector<32x48xbf16>, vector<8x48xf32> -> vector<8x48xf32>
      %127 = vector.extract_strided_slice %126 {offsets = [0, 0], sizes = [8, 8], strides = [1, 1]} : vector<8x48xf32> to vector<8x8xf32>
      %cst_60 = arith.constant 0.353553385 : f32
      %128 = vector.broadcast %cst_60 : f32 to vector<8x8xf32>
      %129 = arith.mulf %127, %128 : vector<8x8xf32>
      %130 = arith.truncf %129 : vector<8x8xf32> to vector<8x8xbf16>
      %c0_61 = arith.constant 0 : index
      %c0_62 = arith.constant 0 : index
      %c0_63 = arith.constant 0 : index
      %131 = vector.load %arg16[%c0_61, %c0_62, %c0_63] : memref<2x8x8xbf16, #tpu.memory_space<vmem>>, vector<1x8x8xbf16>
      %132 = vector.shape_cast %131 : vector<1x8x8xbf16> to vector<8x8xbf16>
      %133 = vector.shape_cast %130 : vector<8x8xbf16> to vector<1x8x8xbf16>
      tpu.vector_store %arg16[%c0_61, %c0_62, %c0_63], %133 {strides = array<i32>} : memref<2x8x8xbf16, #tpu.memory_space<vmem>>, vector<1x8x8xbf16>,
      %134 = vector.extract_strided_slice %126 {offsets = [0, 16], sizes = [8, 8], strides = [1, 1]} : vector<8x48xf32> to vector<8x8xf32>
      %135 = arith.truncf %134 : vector<8x8xf32> to vector<8x8xbf16>
      %c0_64 = arith.constant 0 : index
      %c0_65 = arith.constant 0 : index
      %c0_66 = arith.constant 0 : index
      %136 = vector.load %arg17[%c0_64, %c0_65, %c0_66] : memref<2x8x8xbf16, #tpu.memory_space<vmem>>, vector<1x8x8xbf16>
      %137 = vector.shape_cast %136 : vector<1x8x8xbf16> to vector<8x8xbf16>
      %138 = vector.shape_cast %135 : vector<8x8xbf16> to vector<1x8x8xbf16>
      tpu.vector_store %arg17[%c0_64, %c0_65, %c0_66], %138 {strides = array<i32>} : memref<2x8x8xbf16, #tpu.memory_space<vmem>>, vector<1x8x8xbf16>,
      %139 = vector.extract_strided_slice %126 {offsets = [0, 32], sizes = [8, 8], strides = [1, 1]} : vector<8x48xf32> to vector<8x8xf32>
      %140 = arith.truncf %139 : vector<8x8xf32> to vector<8x8xbf16>
      %c0_67 = arith.constant 0 : index
      %c0_68 = arith.constant 0 : index
      %c0_69 = arith.constant 0 : index
      %141 = vector.load %arg18[%c0_67, %c0_68, %c0_69] : memref<2x8x8xbf16, #tpu.memory_space<vmem>>, vector<1x8x8xbf16>
      %142 = vector.shape_cast %141 : vector<1x8x8xbf16> to vector<8x8xbf16>
      %143 = vector.shape_cast %140 : vector<8x8xbf16> to vector<1x8x8xbf16>
      tpu.vector_store %arg18[%c0_67, %c0_68, %c0_69], %143 {strides = array<i32>} : memref<2x8x8xbf16, #tpu.memory_space<vmem>>, vector<1x8x8xbf16>,
      %144 = vector.extract_strided_slice %126 {offsets = [0, 8], sizes = [8, 8], strides = [1, 1]} : vector<8x48xf32> to vector<8x8xf32>
      %cst_70 = arith.constant 0.353553385 : f32
      %145 = vector.broadcast %cst_70 : f32 to vector<8x8xf32>
      %146 = arith.mulf %144, %145 : vector<8x8xf32>
      %147 = arith.truncf %146 : vector<8x8xf32> to vector<8x8xbf16>
      %c1 = arith.constant 1 : index
      %c0_71 = arith.constant 0 : index
      %c0_72 = arith.constant 0 : index
      %148 = vector.load %arg16[%c1, %c0_71, %c0_72] : memref<2x8x8xbf16, #tpu.memory_space<vmem>>, vector<1x8x8xbf16>
      %149 = vector.shape_cast %148 : vector<1x8x8xbf16> to vector<8x8xbf16>
      %150 = vector.shape_cast %147 : vector<8x8xbf16> to vector<1x8x8xbf16>
      tpu.vector_store %arg16[%c1, %c0_71, %c0_72], %150 {strides = array<i32>} : memref<2x8x8xbf16, #tpu.memory_space<vmem>>, vector<1x8x8xbf16>,
      %151 = vector.extract_strided_slice %126 {offsets = [0, 24], sizes = [8, 8], strides = [1, 1]} : vector<8x48xf32> to vector<8x8xf32>
      %152 = arith.truncf %151 : vector<8x8xf32> to vector<8x8xbf16>
      %c1_73 = arith.constant 1 : index
      %c0_74 = arith.constant 0 : index
      %c0_75 = arith.constant 0 : index
      %153 = vector.load %arg17[%c1_73, %c0_74, %c0_75] : memref<2x8x8xbf16, #tpu.memory_space<vmem>>, vector<1x8x8xbf16>
      %154 = vector.shape_cast %153 : vector<1x8x8xbf16> to vector<8x8xbf16>
      %155 = vector.shape_cast %152 : vector<8x8xbf16> to vector<1x8x8xbf16>
      tpu.vector_store %arg17[%c1_73, %c0_74, %c0_75], %155 {strides = array<i32>} : memref<2x8x8xbf16, #tpu.memory_space<vmem>>, vector<1x8x8xbf16>,
      %156 = vector.extract_strided_slice %126 {offsets = [0, 40], sizes = [8, 8], strides = [1, 1]} : vector<8x48xf32> to vector<8x8xf32>
      %157 = arith.truncf %156 : vector<8x8xf32> to vector<8x8xbf16>
      %c1_76 = arith.constant 1 : index
      %c0_77 = arith.constant 0 : index
      %c0_78 = arith.constant 0 : index
      %158 = vector.load %arg18[%c1_76, %c0_77, %c0_78] : memref<2x8x8xbf16, #tpu.memory_space<vmem>>, vector<1x8x8xbf16>
      %159 = vector.shape_cast %158 : vector<1x8x8xbf16> to vector<8x8xbf16>
      %160 = vector.shape_cast %157 : vector<8x8xbf16> to vector<1x8x8xbf16>
      tpu.vector_store %arg18[%c1_76, %c0_77, %c0_78], %160 {strides = array<i32>} : memref<2x8x8xbf16, #tpu.memory_space<vmem>>, vector<1x8x8xbf16>,
    } else {
    }
    %c8_i32 = arith.constant 8 : i32
    %3 = arith.muli %arg1, %c8_i32 : i32
    %4 = tpu.assume_multiple %3, 8 : i32
    %c0 = arith.constant 0 : index
    %5 = arith.index_cast %4 : i32 to index
    %c0_1 = arith.constant 0 : index
    %6 = vector.load %arg16[%c0, %5, %c0_1] : memref<2x8x8xbf16, #tpu.memory_space<vmem>>, vector<2x8x8xbf16>
    %c0_2 = arith.constant 0 : index
    %7 = arith.index_cast %4 : i32 to index
    %c0_3 = arith.constant 0 : index
    %8 = vector.load %arg2[%c0_2, %7, %c0_3] : memref<1x8x32xf32, #tpu.memory_space<vmem>>, vector<1x8x32xf32>
    %9 = vector.shape_cast %8 : vector<1x8x32xf32> to vector<8x32xf32>
    %cst = arith.constant 0xFF800000 : f32
    %10 = vector.broadcast %cst : f32 to vector<2x8x1xf32>
    %cst_4 = arith.constant 0.000000e+00 : f32
    %11 = vector.broadcast %cst_4 : f32 to vector<2x8x1xf32>
    %cst_5 = arith.constant 0.000000e+00 : f32
    %12 = vector.broadcast %cst_5 : f32 to vector<2x8x8xf32>
    %c0_6 = arith.constant 0 : index
    %c0_7 = arith.constant 0 : index
    %c0_8 = arith.constant 0 : index
    %13 = vector.load %arg17[%c0_6, %c0_7, %c0_8] : memref<2x8x8xbf16, #tpu.memory_space<vmem>>, vector<2x8x8xbf16>
    %c0_9 = arith.constant 0 : index
    %c0_10 = arith.constant 0 : index
    %c0_11 = arith.constant 0 : index
    %14 = vector.load %arg18[%c0_9, %c0_10, %c0_11] : memref<2x8x8xbf16, #tpu.memory_space<vmem>>, vector<2x8x8xbf16>
    "tpu.trace_start"() <{level = 10 : i32, message = "hqd,hkd->hqk"}> : () -> ()
    %cst_12 = arith.constant dense<0.000000e+00> : vector<2x8x8xf32>
    %15 = tpu.matmul %6, %13, %cst_12 {dimension_numbers = #tpu.dot_dimension_numbers<[2], [2], [1], [1], [0, 0, 0, 1, 1, 1], [0], [0]>} : vector<2x8x8xbf16>, vector<2x8x8xbf16>, vector<2x8x8xf32> -> vector<2x8x8xf32>
    "tpu.trace_stop"() : () -> ()
    %cst_13 = arith.constant dense<0xFF800000> : vector<2x8xf32>
    %16 = vector.multi_reduction <maximumf>, %15, %cst_13 [2] : vector<2x8x8xf32> to vector<2x8xf32>
    %17 = vector.shape_cast %16 : vector<2x8xf32> to vector<2x8x1xf32>
    %18 = arith.maximumf %10, %17 : vector<2x8x1xf32>
    %19 = arith.subf %10, %18 : vector<2x8x1xf32>
    %20 = math.exp %19 : vector<2x8x1xf32>
    %21 = vector.broadcast %18 : vector<2x8x1xf32> to vector<2x8x8xf32>
    %22 = arith.subf %15, %21 : vector<2x8x8xf32>
    %23 = math.exp %22 : vector<2x8x8xf32>
    %24 = arith.mulf %20, %11 : vector<2x8x1xf32>
    %cst_14 = arith.constant dense<0.000000e+00> : vector<2x8xf32>
    %25 = vector.multi_reduction <add>, %23, %cst_14 [2] : vector<2x8x8xf32> to vector<2x8xf32>
    %26 = vector.shape_cast %25 : vector<2x8xf32> to vector<2x8x1xf32>
    %27 = arith.addf %24, %26 : vector<2x8x1xf32>
    %28 = vector.broadcast %20 : vector<2x8x1xf32> to vector<2x8x8xf32>
    %29 = arith.mulf %28, %12 : vector<2x8x8xf32>
    %30 = arith.truncf %23 : vector<2x8x8xf32> to vector<2x8x8xbf16>
    "tpu.trace_start"() <{level = 10 : i32, message = "hqk,hkd->hqd"}> : () -> ()
    %cst_15 = arith.constant dense<0.000000e+00> : vector<2x8x8xf32>
    %31 = tpu.matmul %30, %14, %cst_15 {dimension_numbers = #tpu.dot_dimension_numbers<[2], [1], [1], [2], [0, 0, 0, 1, 1, 2], [0], [0]>} : vector<2x8x8xbf16>, vector<2x8x8xbf16>, vector<2x8x8xf32> -> vector<2x8x8xf32>
    "tpu.trace_stop"() : () -> ()
    %32 = arith.addf %29, %31 : vector<2x8x8xf32>
    %33 = tpu.reciprocal %27 {approx = true} : vector<2x8x1xf32> -> vector<2x8x1xf32>
    %34 = vector.broadcast %33 : vector<2x8x1xf32> to vector<2x8x8xf32>
    %35 = arith.mulf %32, %34 : vector<2x8x8xf32>
    %36 = vector.extract_strided_slice %35 {offsets = [0, 0, 0], sizes = [1, 8, 8], strides = [1, 1, 1]} : vector<2x8x8xf32> to vector<1x8x8xf32>
    %37 = vector.shape_cast %36 : vector<1x8x8xf32> to vector<8x8xf32>
    %38 = vector.extract_strided_slice %35 {offsets = [1, 0, 0], sizes = [1, 8, 8], strides = [1, 1, 1]} : vector<2x8x8xf32> to vector<1x8x8xf32>
    %39 = vector.shape_cast %38 : vector<1x8x8xf32> to vector<8x8xf32>
    %40 = tpu.concatenate %37, %39 in 1 : vector<8x8xf32>, vector<8x8xf32> -> vector<8x16xf32>
    %41 = arith.truncf %40 : vector<8x16xf32> to vector<8x16xbf16>
    %c0_16 = arith.constant 0 : index
    %c0_17 = arith.constant 0 : index
    %42 = vector.load %arg6[%c0_16, %c0_17] : memref<16x32xbf16, #tpu.memory_space<vmem>>, vector<16x32xbf16>
    %cst_18 = arith.constant dense<0.000000e+00> : vector<8x32xf32>
    %43 = tpu.matmul %41, %42, %cst_18 {dimension_numbers = #tpu.dot_dimension_numbers<[1], [0], [0], [1], [0, 0, 1, 1], [], []>} : vector<8x16xbf16>, vector<16x32xbf16>, vector<8x32xf32> -> vector<8x32xf32>
    %44 = arith.addf %43, %9 : vector<8x32xf32>
    %c0_19 = arith.constant 0 : index
    %c0_20 = arith.constant 0 : index
    %45 = vector.load %arg7[%c0_19, %c0_20] : memref<1x32xf32, #tpu.memory_space<vmem>>, vector<1x32xf32>
    %c0_21 = arith.constant 0 : index
    %c0_22 = arith.constant 0 : index
    %46 = vector.load %arg8[%c0_21, %c0_22] : memref<1x32xf32, #tpu.memory_space<vmem>>, vector<1x32xf32>
    %cst_23 = arith.constant dense<0.000000e+00> : vector<8xf32>
    %47 = vector.multi_reduction <add>, %44, %cst_23 [1] : vector<8x32xf32> to vector<8xf32>
    %48 = vector.shape_cast %47 : vector<8xf32> to vector<8x1xf32>
    %cst_24 = arith.constant 3.200000e+01 : f32
    %49 = vector.broadcast %cst_24 : f32 to vector<8x1xf32>
    %50 = arith.divf %48, %49 : vector<8x1xf32>
    %51 = vector.broadcast %50 : vector<8x1xf32> to vector<8x32xf32>
    %52 = arith.subf %44, %51 : vector<8x32xf32>
    %53 = arith.mulf %52, %52 : vector<8x32xf32>
    %cst_25 = arith.constant dense<0.000000e+00> : vector<8xf32>
    %54 = vector.multi_reduction <add>, %53, %cst_25 [1] : vector<8x32xf32> to vector<8xf32>
    %55 = vector.shape_cast %54 : vector<8xf32> to vector<8x1xf32>
    %cst_26 = arith.constant 3.200000e+01 : f32
    %56 = vector.broadcast %cst_26 : f32 to vector<8x1xf32>
    %57 = arith.divf %55, %56 : vector<8x1xf32>
    %58 = vector.broadcast %50 : vector<8x1xf32> to vector<8x32xf32>
    %59 = arith.subf %44, %58 : vector<8x32xf32>
    %cst_27 = arith.constant 9.99999974E-6 : f32
    %60 = vector.broadcast %cst_27 : f32 to vector<8x1xf32>
    %61 = arith.addf %57, %60 : vector<8x1xf32>
    %62 = math.rsqrt %61 : vector<8x1xf32>
    %63 = vector.broadcast %62 : vector<8x1xf32> to vector<8x32xf32>
    %64 = arith.mulf %59, %63 : vector<8x32xf32>
    %65 = vector.broadcast %45 : vector<1x32xf32> to vector<8x32xf32>
    %66 = arith.mulf %64, %65 : vector<8x32xf32>
    %67 = vector.broadcast %46 : vector<1x32xf32> to vector<8x32xf32>
    %68 = arith.addf %66, %67 : vector<8x32xf32>
    %69 = arith.truncf %68 : vector<8x32xf32> to vector<8x32xbf16>
    %c0_28 = arith.constant 0 : index
    %c0_29 = arith.constant 0 : index
    %70 = vector.load %arg9[%c0_28, %c0_29] : memref<32x64xbf16, #tpu.memory_space<vmem>>, vector<32x64xbf16>
    %cst_30 = arith.constant dense<0.000000e+00> : vector<8x64xf32>
    %71 = tpu.matmul %69, %70, %cst_30 {dimension_numbers = #tpu.dot_dimension_numbers<[1], [0], [0], [1], [0, 0, 1, 1], [], []>} : vector<8x32xbf16>, vector<32x64xbf16>, vector<8x64xf32> -> vector<8x64xf32>
    %c0_31 = arith.constant 0 : index
    %c0_32 = arith.constant 0 : index
    %72 = vector.load %arg10[%c0_31, %c0_32] : memref<1x64xf32, #tpu.memory_space<vmem>>, vector<1x64xf32>
    %73 = vector.broadcast %72 : vector<1x64xf32> to vector<8x64xf32>
    %74 = arith.addf %71, %73 : vector<8x64xf32>
    %cst_33 = arith.constant 5.000000e-01 : f32
    %75 = vector.broadcast %cst_33 : f32 to vector<8x64xf32>
    %76 = arith.mulf %75, %74 : vector<8x64xf32>
    %cst_34 = arith.constant 4.471500e-02 : f32
    %77 = vector.broadcast %cst_34 : f32 to vector<8x64xf32>
    %78 = arith.mulf %77, %74 : vector<8x64xf32>
    %79 = arith.mulf %78, %74 : vector<8x64xf32>
    %80 = arith.mulf %79, %74 : vector<8x64xf32>
    %81 = arith.addf %74, %80 : vector<8x64xf32>
    %cst_35 = arith.constant 0.797884583 : f32
    %82 = vector.broadcast %cst_35 : f32 to vector<8x64xf32>
    %83 = arith.mulf %82, %81 : vector<8x64xf32>
    %84 = math.tanh %83 : vector<8x64xf32>
    %cst_36 = arith.constant 1.000000e+00 : f32
    %85 = vector.broadcast %cst_36 : f32 to vector<8x64xf32>
    %86 = arith.addf %85, %84 : vector<8x64xf32>
    %87 = arith.mulf %76, %86 : vector<8x64xf32>
    %88 = arith.truncf %87 : vector<8x64xf32> to vector<8x64xbf16>
    %c0_37 = arith.constant 0 : index
    %c0_38 = arith.constant 0 : index
    %89 = vector.load %arg11[%c0_37, %c0_38] : memref<64x32xbf16, #tpu.memory_space<vmem>>, vector<64x32xbf16>
    %cst_39 = arith.constant dense<0.000000e+00> : vector<8x32xf32>
    %90 = tpu.matmul %88, %89, %cst_39 {dimension_numbers = #tpu.dot_dimension_numbers<[1], [0], [0], [1], [0, 0, 1, 1], [], []>} : vector<8x64xbf16>, vector<64x32xbf16>, vector<8x32xf32> -> vector<8x32xf32>
    %c0_40 = arith.constant 0 : index
    %c0_41 = arith.constant 0 : index
    %91 = vector.load %arg12[%c0_40, %c0_41] : memref<1x32xf32, #tpu.memory_space<vmem>>, vector<1x32xf32>
    %92 = vector.broadcast %91 : vector<1x32xf32> to vector<8x32xf32>
    %93 = arith.addf %90, %92 : vector<8x32xf32>
    %94 = arith.addf %93, %44 : vector<8x32xf32>
    %c0_42 = arith.constant 0 : index
    %c0_43 = arith.constant 0 : index
    %c0_44 = arith.constant 0 : index
    %95 = vector.load %arg15[%c0_42, %c0_43, %c0_44] : memref<1x8x32xf32, #tpu.memory_space<vmem>>, vector<1x8x32xf32>
    %96 = vector.shape_cast %95 : vector<1x8x32xf32> to vector<8x32xf32>
    %97 = vector.shape_cast %94 : vector<8x32xf32> to vector<1x8x32xf32>
    tpu.vector_store %arg15[%c0_42, %c0_43, %c0_44], %97 {strides = array<i32>} : memref<1x8x32xf32, #tpu.memory_space<vmem>>, vector<1x8x32xf32>,
    return
  }
  func.func @transform_0(%arg0: i32, %arg1: i32) -> (i32, i32, i32) {
    %c0_i32 = arith.constant 0 : i32
    %c0_i32_0 = arith.constant 0 : i32
    %c0_i32_1 = arith.constant 0 : i32
    return %arg0, %c0_i32, %c0_i32_0 : i32, i32, i32
  }
  func.func @transform_1(%arg0: i32, %arg1: i32) -> (i32, i32) {
    %c0_i32 = arith.constant 0 : i32
    %c0_i32_0 = arith.constant 0 : i32
    %c0_i32_1 = arith.constant 0 : i32
    return %c0_i32, %c0_i32_0 : i32, i32
  }
  func.func @transform_2(%arg0: i32, %arg1: i32) -> (i32, i32) {
    %c0_i32 = arith.constant 0 : i32
    %c0_i32_0 = arith.constant 0 : i32
    %c0_i32_1 = arith.constant 0 : i32
    return %c0_i32, %c0_i32_0 : i32, i32
  }
  func.func @transform_3(%arg0: i32, %arg1: i32) -> (i32, i32) {
    %c0_i32 = arith.constant 0 : i32
    %c0_i32_0 = arith.constant 0 : i32
    %c0_i32_1 = arith.constant 0 : i32
    return %c0_i32, %c0_i32_0 : i32, i32
  }
  func.func @transform_4(%arg0: i32, %arg1: i32) -> (i32, i32) {
    %c0_i32 = arith.constant 0 : i32
    %c0_i32_0 = arith.constant 0 : i32
    %c0_i32_1 = arith.constant 0 : i32
    return %c0_i32, %c0_i32_0 : i32, i32
  }
  func.func @transform_5(%arg0: i32, %arg1: i32) -> (i32, i32) {
    %c0_i32 = arith.constant 0 : i32
    %c0_i32_0 = arith.constant 0 : i32
    %c0_i32_1 = arith.constant 0 : i32
    return %c0_i32, %c0_i32_0 : i32, i32
  }
  func.func @transform_6(%arg0: i32, %arg1: i32) -> (i32, i32) {
    %c0_i32 = arith.constant 0 : i32
    %c0_i32_0 = arith.constant 0 : i32
    %c0_i32_1 = arith.constant 0 : i32
    return %c0_i32, %c0_i32_0 : i32, i32
  }
  func.func @transform_7(%arg0: i32, %arg1: i32) -> (i32, i32) {
    %c0_i32 = arith.constant 0 : i32
    %c0_i32_0 = arith.constant 0 : i32
    %c0_i32_1 = arith.constant 0 : i32
    return %c0_i32, %c0_i32_0 : i32, i32
  }
  func.func @transform_8(%arg0: i32, %arg1: i32) -> (i32, i32) {
    %c0_i32 = arith.constant 0 : i32
    %c0_i32_0 = arith.constant 0 : i32
    %c0_i32_1 = arith.constant 0 : i32
    return %c0_i32, %c0_i32_0 : i32, i32
  }
  func.func @transform_9(%arg0: i32, %arg1: i32) -> (i32, i32) {
    %c0_i32 = arith.constant 0 : i32
    %c0_i32_0 = arith.constant 0 : i32
    %c0_i32_1 = arith.constant 0 : i32
    return %c0_i32, %c0_i32_0 : i32, i32
  }
  func.func @transform_10(%arg0: i32, %arg1: i32) -> (i32, i32) {
    %c0_i32 = arith.constant 0 : i32
    %c0_i32_0 = arith.constant 0 : i32
    %c0_i32_1 = arith.constant 0 : i32
    return %c0_i32, %c0_i32_0 : i32, i32
  }
  func.func @transform_11(%arg0: i32, %arg1: i32) -> (i32, i32) {
    %c0_i32 = arith.constant 0 : i32
    %c0_i32_0 = arith.constant 0 : i32
    %c0_i32_1 = arith.constant 0 : i32
    return %c0_i32, %c0_i32_0 : i32, i32
  }
  func.func @transform_12(%arg0: i32, %arg1: i32) -> (i32, i32) {
    %c0_i32 = arith.constant 0 : i32
    %c0_i32_0 = arith.constant 0 : i32
    %c0_i32_1 = arith.constant 0 : i32
    return %c0_i32, %c0_i32_0 : i32, i32
  }
  func.func @transform_13(%arg0: i32, %arg1: i32) -> (i32, i32, i32) {
    %c0_i32 = arith.constant 0 : i32
    %c0_i32_0 = arith.constant 0 : i32
    return %arg0, %arg1, %c0_i32 : i32, i32, i32
  }
}

</mosaic_0001>

<bundles_post_ra>
// kernel: tpu_custom_call.1
= control target key start
LH: loop header
LB: loop body
LE: loop exit
PB: predicated region body
PF: predicated region fallthrough
CT: control target
= control target key end

     0   :  { %s2196_s0 = inlined_call_operand.vmem [shape: f32[2,8,32], index: 0, kind: input, shape index: {}]   ;;  %s2197_s1 = inlined_call_operand.hbm [shape: f32[1,32], index: 1, kind: input, shape index: {}]   ;;  %s2198_s2 = inlined_call_operand.hbm [shape: f32[1,32], index: 2, kind: input, shape index: {}]   ;;  %s2199_s3 = inlined_call_operand.vmem [shape: bf16[32,48], index: 3, kind: input, shape index: {}]   ;;  %s2200_s4 = inlined_call_operand.hbm [shape: bf16[16,32], index: 4, kind: input, shape index: {}]   ;;  %s2201_s5 = inlined_call_operand.hbm [shape: f32[1,32], index: 5, kind: input, shape index: {}]   ;;  %s2202_s6 = inlined_call_operand.hbm [shape: f32[1,32], index: 6, kind: input, shape index: {}]   ;;  %s2203_s7 = inlined_call_operand.vmem [shape: bf16[32,64], index: 7, kind: input, shape index: {}]   ;;  %s2204_s8 = inlined_call_operand.hbm [shape: f32[1,64], index: 8, kind: input, shape index: {}]   ;;  %s2205_s9 = inlined_call_operand.vmem [shape: bf16[64,32], index: 9, kind: input, shape index: {}]   ;;  %s2206_s10 = inlined_call_operand.vmem [shape: f32[1,32], index: 10, kind: input, shape index: {}]   ;;  %s2207_s11 = inlined_call_operand.vmem [shape: f32[1,32], index: 11, kind: input, shape index: {}]   ;;  %s2208_s12 = inlined_call_operand.vmem [shape: f32[1,32], index: 12, kind: input, shape index: {}]   ;;  %s2209_s13 = inlined_call_operand.hbm [shape: f32[2,8,32], index: 13, kind: output, shape index: {}]  }
   0x1   :  { %2217 = sst [smem:[#allocation26_spill]] %s2197_s1 }
   0x2   :  { %2218 = sst [smem:[#allocation27_spill]] %s2198_s2 }
   0x3   :  { %18 = vsyncpa [#allocation6], 0 }
   0x4   :  { %19 = vsyncpa [#allocation9], 0 }
   0x5   :  { %20 = vsyncpa [#allocation12], 0 }
   0x6   :  { %21 = vsyncpa [#allocation15], 0 }
   0x7   :  { %22 = vsyncpa [#allocation7], 0 }
   0x8   :  { %24 = vsyncpa [#allocation7 + $0x1], 0  ;;  %s1911_s25 = smov 0   ;;  %s1913_s26 = smov 0  }
   0x9   :  { %s1915_s27 = smov 0   ;;  %s1917_s28 = smov 0  }
   0xa   :  { %s1919_s11 = smov 0   ;;  %s1921_s12 = smov 0  }
   0xb LB: > { %2219 = sst [smem:[#allocation22_spill]] %s1810_s27  ;;  %s1292_s29 = sadd.s32 4294967295, %s1822_s12   ;;  %s1822_s12 = sphi %s1921_s12, %s30_s12   ;;  %s1818_s11 = sphi %s1919_s11, %s2238_s11   ;;  %s1814_s28 = sphi %s1917_s28, %s2237_s28   ;;  %s1810_s27 = sphi %s1915_s27, %s2236_s27   ;;  %s1806_s26 = sphi %s1913_s26, %s2240_s26   ;;  %s1802_s25 = sphi %s1911_s25, %s2239_s25  }
   0xc   : > { %2220 = sst [smem:[#allocation23_spill]] %s1818_s11  ;;  %s1293_s30 = sadd.s32 4294967294, %s1822_s12  }
   0xd   : > { %s42_s14 = sadd.s32 1, %s1818_s11  ;;  %s329_s15 = sadd.s32 1, %s1810_s27 }
   0xe   : > { %p44_p0 = scmp.ge.s32.totalorder %s42_s14, 2  ;;  %p339_p1 = scmp.ne.s32.totalorder %s1810_s27, %s1806_s26 }
   0xf   : > { %p340_p2 = scmp.eq.s32.totalorder %s1292_s29, 1  ;;  %p345_p3 = scmp.ne.s32.totalorder %s1806_s26, %s1802_s25 }
  0x10   : > { %s2242_s14 = smov (%p44_p0, %s42_s14), 0  ;;  %p346_p5 = scmp.eq.s32.totalorder %s1293_s30, 1 }
  0x11   : > { %2221 = sst [smem:[#allocation24_spill]] %s2242_s14  ;;  %p1951_p4 = por %p340_p2, %p339_p1 }
  0x12   : > { %s324_s17 = ssub.s32 %s1818_s11, %s2242_s14  ;;  %p1294_p6 = scmp.ge.s32.totalorder %s1822_s12, 1 }
  0x13   : > { %s2222_s16 = scalar_select %p1951_p4, 1, 0 }
  0x14   : > { %p327_p7 = scmp.eq.s32.totalorder %s324_s17, 0  ;;  %p1958_p8 = por %p346_p5, %p345_p3 }
  0x15   : > { %p353_p9 = scmp.lt.s32.totalorder %s1822_s12, 3  ;;  %p1970_p11 = scmp.eq.s32.totalorder %s1292_s29, 0 }
  0x16   : > { %s2223_s18 = scalar_select %p1958_p8, 1, 0 }
  0x17   : > { %s1964_s19 = scalar_select %p327_p7, %s1810_s27, %s329_s15  }
  0x18   : > { %p1966_p10 = pnand %p1294_p6, %p353_p9  ;;  %s1824_s22 = smov [#allocation8]  }
  0x19   : > { %2224 = sst [smem:[#allocation25_spill]] %s1964_s19  ;;  %s377_s23 = sshll.u32 %s1824_s22, 4  ;;  %s378_s23 = int_to_ptr.vmem [resolvable:$true] %s377_s23 }
  0x1a   : > { %s2225_s20 = scalar_select %p1966_p10, 1, 0 }
  0x1b   : > { %s2226_s21 = scalar_select %p1970_p11, 1, 0 }
  0x1c   : > { %p1447_p12 = pneg %p1966_p10  ;;  %s1825_s24 = smov [#allocation11]  }
  0x1d   : > { %s404_s30 = sshll.u32 %s1825_s24, 4  ;;  %s1585_s17 = scalar_lea.vmem %s378_s23, 16  ;;  %s405_s30 = int_to_ptr.vmem [resolvable:$true] %s404_s30 }
  0x1e   : > { %p1978_p13 = pnand %p1970_p11, %p1447_p12  ;;  %p1586_p1 = scmp.ne.s32.totalorder %s378_s23, %s1585_s17 }
  0x1f   : > { %s1592_s22 = scalar_lea.vmem %s378_s23, 32  ;;  %p1593_p5 = scmp.lt.s32.totalorder %s378_s23, %s378_s23 }
  0x20   : > { %p1984_p0 = pneg %p1978_p13  ;;  %p1594_p6 = scmp.lt.s32.totalorder %s1592_s22, %s1585_s17 }
  0x22   : > { %p1588_p2 = pnand %p1586_p1, %p1984_p0  ;;  %p1595_p7 = por %p1594_p6, %p1593_p5 }
  0x24   : > { %p1589_p3 = pneg %p1588_p2 }
  0x26   : > { %p1596_p9 = pnand %p1595_p7, %p1589_p3 }
  0x28   : > { %1599 = shalt.err (!%p1596_p9)
}
  0x29   : > { %s2229_s2 = sld [smem:[#allocation27_spill]]  ;;  %s1611_s11 = scalar_lea.vmem %s405_s30, 16 }
  0x2a   : > { %p1612_p12 = scmp.ne.s32.totalorder %s405_s30, %s1611_s11  ;;  %s1618_s19 = scalar_lea.vmem %s405_s30, 32 }
  0x2b   : > { %p1619_p1 = scmp.lt.s32.totalorder %s405_s30, %s405_s30  ;;  %p1620_p2 = scmp.lt.s32.totalorder %s1618_s19, %s1611_s11 }
  0x2c   : > { %p1614_p8 = pnand %p1612_p12, %p1984_p0 }
  0x2d   : > { %p1621_p11 = por %p1620_p2, %p1619_p1 }
  0x2e   : > { %p1615_p4 = pneg %p1614_p8 }
  0x2f   : > { %1453 = dma.hbm_to_vmem [thread:$0]  (!%p1978_p13), %s2229_s2, 16, %s378_s23, [#allocation9]  }
  0x30   : > { %p1622_p10 = pnand %p1621_p11, %p1615_p4 }
  0x32   : > { %1625 = shalt.err (!%p1622_p10)
}
  0x33   : > { %1459 = dma.hbm_to_vmem [thread:$0]  (!%p1978_p13), %s2201_s5, 16, %s405_s30, [#allocation12]  }
  0x34   : > { %s1826_s14 = smov [#allocation5]   ;;  %s1827_s24 = smov [#allocation10]  }
  0x35   : > { %s366_s23 = sshll.u32 %s1826_s14, 4  ;;  %s390_s2 = sshll.u32 %s1827_s24, 4  ;;  %s367_s23 = int_to_ptr.vmem [resolvable:$true] %s366_s23  ;;  %s391_s2 = int_to_ptr.vmem [resolvable:$true] %s390_s2 }
  0x36   : > { %s1637_s27 = scalar_lea.vmem %s367_s23, 16  ;;  %s1644_s11 = scalar_lea.vmem %s367_s23, 32 }
  0x37   : > { %p1638_p8 = scmp.ne.s32.totalorder %s367_s23, %s1637_s27  ;;  %p1645_p4 = scmp.lt.s32.totalorder %s367_s23, %s367_s23 }
  0x38   : > { %p1646_p10 = scmp.lt.s32.totalorder %s1644_s11, %s1637_s27 }
  0x39   : > { %p1640_p3 = pnand %p1638_p8, %p1984_p0 }
  0x3a   : > { %p1647_p11 = por %p1646_p10, %p1645_p4 }
  0x3b   : > { %p1641_p5 = pneg %p1640_p3 }
  0x3d   : > { %p1648_p6 = pnand %p1647_p11, %p1641_p5 }
  0x3f   : > { %1651 = shalt.err (!%p1648_p6)
}
  0x40   : > { %s2230_s1 = sld [smem:[#allocation26_spill]]  ;;  %s1663_s17 = scalar_lea.vmem %s391_s2, 128 }
  0x41   : > { %p1664_p7 = scmp.ne.s32.totalorder %s391_s2, %s1663_s17  ;;  %p1671_p1 = scmp.lt.s32.totalorder %s391_s2, %s391_s2 }
  0x42   : > { %p1672_p2 = scmp.lt.s32.totalorder %s1663_s17, %s1663_s17 }
  0x43   : > { %p1666_p9 = pnand %p1664_p7, %p1984_p0 }
  0x44   : > { %p1673_p8 = por %p1672_p2, %p1671_p1 }
  0x45   : > { %p1667_p12 = pneg %p1666_p9 }
  0x46   : > { %1450 = dma.hbm_to_vmem [thread:$0]  (!%p1978_p13), %s2230_s1, 16, %s367_s23, [#allocation6]  }
  0x47   : > { %p1674_p3 = pnand %p1673_p8, %p1667_p12 }
  0x49   : > { %1677 = shalt.err (!%p1674_p3)
}
  0x4a   : > { %s1828_s27 = smov 64   ;;  %s1829_s22 = smov 4  }
  0x4b   : > { %1456 = dma.hbm_to_vmem [thread:$0]  (!%p1978_p13), %s2200_s4, 128, %s391_s2, [#allocation9], %s1828_s27, %s1828_s27, %s1829_s22  }
  0x4c   : > { %s1830_s23 = smov [#allocation13]   ;;  %s1831_s19 = smov [#allocation14]  }
  0x4d   : > { %s415_s11 = sshll.u32 %s1830_s23, 4  ;;  %s429_s30 = sshll.u32 %s1831_s19, 4  ;;  %s416_s11 = int_to_ptr.vmem [resolvable:$true] %s415_s11  ;;  %s430_s30 = int_to_ptr.vmem [resolvable:$true] %s429_s30 }
  0x4e   : > { %s1689_s1 = scalar_lea.vmem %s416_s11, 16  ;;  %s1696_s17 = scalar_lea.vmem %s416_s11, 32 }
  0x4f   : > { %p1690_p5 = scmp.ne.s32.totalorder %s416_s11, %s1689_s1  ;;  %p1697_p11 = scmp.lt.s32.totalorder %s416_s11, %s416_s11 }
  0x50   : > { %p1698_p6 = scmp.lt.s32.totalorder %s1696_s17, %s1689_s1 }
  0x51   : > { %p1692_p4 = pnand %p1690_p5, %p1984_p0 }
  0x52   : > { %p1699_p7 = por %p1698_p6, %p1697_p11 }
  0x53   : > { %p1693_p10 = pneg %p1692_p4 }
  0x55   : > { %p1700_p9 = pnand %p1699_p7, %p1693_p10 }
  0x57   : > { %1703 = shalt.err (!%p1700_p9)
}
  0x58   : > { %1462 = dma.hbm_to_vmem [thread:$0]  (!%p1978_p13), %s2202_s6, 16, %s416_s11, [#allocation12]  }
  0x59   : > { %s1715_s27 = scalar_lea.vmem %s430_s30, 16  ;;  %s1722_s22 = scalar_lea.vmem %s430_s30, 32 }
  0x5a   : > { %p1716_p12 = scmp.ne.s32.totalorder %s430_s30, %s1715_s27  ;;  %p1723_p8 = scmp.lt.s32.totalorder %s430_s30, %s430_s30 }
  0x5b   : > { %p1724_p3 = scmp.lt.s32.totalorder %s1722_s22, %s1715_s27 }
  0x5c   : > { %p1718_p1 = pnand %p1716_p12, %p1984_p0 }
  0x5d   : > { %p1725_p5 = por %p1724_p3, %p1723_p8 }
  0x5e   : > { %p1719_p2 = pneg %p1718_p1 }
  0x60   : > { %p1726_p4 = pnand %p1725_p5, %p1719_p2 }
  0x62   : > { %1729 = shalt.err (!%p1726_p4)
}
  0x63   : > { %1465 = dma.hbm_to_vmem [thread:$0]  (!%p1978_p13), %s2204_s8, 16, %s430_s30, [#allocation15]  }
  0x64   : > { %p2231_p10 = scmp.ne.s32.totalorder %s2225_s20, 0 }
  0x65   : > { %p2232_p11 = scmp.ne.s32.totalorder (!%p2231_p10), %s2226_s21, 0 }
  0x66   : > { %461 = sbr.rel (%p2231_p10) target bundleno = 2366 (0x93e), region = 72 }
  0x6b   : > { %1781 = dma.done.wait (%p2232_p11), [#allocation6], 16  }
  0x6c   : > { %1783 = vsyncadd (%p2232_p11), [#allocation6], 4294967280 }
  0x6d   : > { %1785 = dma.done.wait (%p2232_p11), [#allocation9], 144  }
  0x6e   : > { %1787 = vsyncadd (%p2232_p11), [#allocation9], 4294967152 }
  0x6f   : > { %1789 = dma.done.wait (%p2232_p11), [#allocation12], 32  }
  0x70   : > { %1791 = vsyncadd (%p2232_p11), [#allocation12], 4294967264 }
  0x71   : > { %1793 = dma.done.wait (%p2232_p11), [#allocation15], 16  }
  0x72   : > { %1795 = vsyncadd (%p2232_p11), [#allocation15], 4294967280  ;;  %p524_p13 = scmp.lt.s32.totalorder %s1814_s28, 1  ;;  %vm536_vm0 = vcmask 261120   ;;  %v1547_v7 = vld [vmem:[%s2199_s3 + $0x8] sm:$0xff]   ;;  %v1832_v8 = vmov 0.0  }
  0x73   : > { %1363 = vmatprep.subr.bf16.mxu0 %v1832_v8  ;;  %vm1833_vm1 = vmmov 0   ;;  %v1548_v9 = vld [vmem:[%s2199_s3] sm:$0xff]   ;;  %1371 = vmatprep.subr.bf16.mxu1 %v1832_v8  ;;  %v1311_v14 = vld [vmem:[#allocation5] ss:$0 sm:$0xff]  ;;  %v1312_v16 = vld [vmem:[#allocation8] ss:$0 sm:$0xff] }
  0x74   : > { %s525_s20 = scalar_select %p524_p13, %s1814_s28, 1  ;;  %1367 = vmatprep.mubr.msk.bf16.mxu0 %vm1833_vm1, %v1832_v8  ;;  %1364 = vmatpush3.bf16.msra.mxu0 %v1547_v7  ;;  %vm627_vm2 = vcmask 60416   ;;  %vm672_vm3 = vcmask 64512   ;;  %vm798_vm4 = vcmask 1043456   ;;  %vm908_vm5 = vcmask 130048  }
  0x75   : > { %1365 = vmatprep.subr.bf16.mxu0 %v1832_v8  ;;  %1373 = vmatprep.mubr.msk.bf16.mxu1 %vm1833_vm1, %v1832_v8  ;;  %s1834_s14 = smov 112   ;;  %s1835_s2 = smov 104   ;;  %vm1099_vm6 = vcmask 523264  }
  0x76   : > { %s1310_s15 = sshll.u32 %s525_s20, 3  ;;  %s1836_s27 = smov 88  }
  0x77   : > { %s527_s11 = scalar_lea.vmem %s2196_s0, %s1310_s15  ;;  %s1837_s22 = smov 120  }
  0x78   : > { %v2053_v0 = vld [vmem:[%s527_s11] sm:$0xff]  ;;  %1366 = vmatpush3.bf16.msra.mxu0 %v1548_v9  ;;  %s1838_s1 = smov 96   ;;  %s1839_s24 = smov 8  }
  0x79   : > { %v537_v1 = vsel %vm536_vm0, %v2053_v0, 0.0  ;;  %1377 = vmatprep.subr.bf16.mxu0 %v1832_v8  ;;  %s1337_s15 = sshll.u32 %s1814_s28, 7  ;;  %p2233_p6 = scmp.ne.s32.totalorder %s2222_s16, 0 }
  0x7a   : > { %538 = vadd.xlane.f32.xlu0 %v537_v1  ;;  %v1549_v1 = vld [vmem:[#allocation10] sm:$0xff]   ;;  %s2149_s19 = scalar_lea.hbm %s2209_s13, %s1337_s15  ;;  %s1840_s17 = smov [#allocation16]  }
 0x103   : > { %v539_v2 = vpop.xlane.xlu0 %538 }
 0x104   : > { %v541_v3 = vmul.f32 0.03125, %v539_v2 }
 0x106   : > { %v542_v4 = vsub.f32 %v2053_v0, %v541_v3 }
 0x108   : > { %v543_v5 = vmul.f32 %v542_v4, %v542_v4 }
 0x10a   : > { %v544_v6 = vsel %vm536_vm0, %v543_v5, 0.0 }
 0x10b   : > { %545 = vadd.xlane.f32.xlu0 %v544_v6 }
 0x194   : > { %v546_v10 = vpop.xlane.xlu0 %545 }
 0x195   : > { %v547_v11 = vmul.f32 0.03125, %v546_v10 }
 0x197   : > { %v548_v12 = vadd.f32 1e-05, %v547_v11 }
 0x199   : > { %1556 = vrsqrt.f32 %v548_v12 }
 0x1a6   : > { %v1557_v13 = vpop.eup %1556 }
 0x1a7   : > { %v550_v15 = vmul.f32 %v1557_v13, %v542_v4 }
 0x1a9   : > { %v557_v17 = vmul.f32 %v1311_v14, %v550_v15 }
 0x1ab   : > { %v564_v18 = vadd.f32 %v1312_v16, %v557_v17 }
 0x1ad   : > { %v565_v19 = vpack.c.bf16 %v564_v18, %v564_v18 }
 0x1af   : > { %1368 = vmatmul.mubr.msk.bf16.vlgmr.msra.gmra.mxu0 %vm536_vm0, %v565_v19 }
 0x1b0   : > { %1379 = vmatprep.mubr.msk.bf16.mxu0 %vm1833_vm1, %v1832_v8 }
 0x26f   : > { %v619_v20 = vpop.f32.mrf.mxu0 }
 0x270   : > { %v625_v21 = vmul.f32 0.35355338, %v619_v20  ;;  %v1340_v22 = vpack.c.bf16 %v619_v20, %v619_v20 }
 0x271   : > { %v1369_v23 = vpop.f32.mrf.mxu0 }
 0x272   : > { %v626_v24 = vpack.c.bf16 %v625_v21, %v625_v21  ;;  %633 = vrot.lane.b32.xlu0 %v1340_v22, %s1834_s14  ;;  %649 = vrot.lane.b32.xlu1 %v1340_v22, %s1835_s2  ;;  %s1734_s14 = sshll.u32 %s1840_s17, 4  ;;  %s1735_s14 = int_to_ptr.vmem [resolvable:$false] %s1734_s14 }
 0x273   : > { %v622_v25 = vpop.f32.mrf.mxu0  ;;  %s1736_s2 = scalar_lea.vmem %s1735_s14, 256 }
 0x274   : > { %628 = vst.msk [vmem:[#allocation2] sm:$0xf] %vm627_vm2, %v626_v24 }
 0x275   : > { %v1370_v26 = vpop.f32.mrf.mxu0 }
 0x276   : > { %654 = vrot.lane.b32.xlu0 %v1340_v22, %s1836_s27  ;;  %644 = vrot.lane.b32.xlu1 %v626_v24, %s1837_s22  ;;  %s521_s22 = sand.u32 1, %s1806_s26  }
 0x277   : > { %s1146_s28 = scalar_lea.sflag [#allocation7], %s521_s22 }
 0x27b   : > { %v664_v36 = vld [vmem:[#allocation2] sm:$0xf] }
 0x2e4   : > { %v634_v27 = vpop.permute.xlu0 %633  ;;  %v650_v28 = vpop.permute.xlu1 %649 }
 0x2e5   : > { %636 = vst.msk [vmem:[#allocation3] sm:$0xf] %vm627_vm2, %v634_v27  ;;  %653 = vst.msk [vmem:[#allocation3 + $0x4] sm:$0xf] %vm627_vm2, %v650_v28 }
 0x2e8   : > { %v655_v29 = vpop.permute.xlu0 %654  ;;  %v645_v30 = vpop.permute.xlu1 %644 }
 0x2e9   : > { %658 = vst.msk [vmem:[#allocation4 + $0x4] sm:$0xf] %vm627_vm2, %v655_v29  ;;  %648 = vst.msk [vmem:[#allocation2 + $0x4] sm:$0xf] %vm627_vm2, %v645_v30 }
 0x2ec   : > { %v668_v31 = vld [vmem:[#allocation3] sm:$0xf]  ;;  %v669_v32 = vld [vmem:[#allocation3 + $0x4] sm:$0xf] }
 0x2ed   : > { %v677_v33 = vsel %vm672_vm3, %v668_v31, 0  ;;  %v723_v34 = vsel %vm672_vm3, %v669_v32, 0 }
 0x2ee   : > { %1372 = vmatpush3.bf16.xpose.msra.mxu1 %v677_v33  ;;  %1378 = vmatpush3.bf16.xpose.msra.mxu0 %v723_v34 }
 0x2ef   : > { %1389 = vmatprep.subr.bf16.mxu0 %v1832_v8  ;;  %1383 = vmatprep.subr.bf16.mxu1 %v1832_v8 }
 0x2f0   : > { %v671_v35 = vld [vmem:[#allocation4 + $0x4] sm:$0xf]  ;;  %v665_v37 = vld [vmem:[#allocation2 + $0x4] sm:$0xf] }
 0x2f1   : > { %v846_v38 = vsel %vm798_vm4, %v671_v35, 0 }
 0x2f5   : > { %1374 = vmatmul.mubr.msk.bf16.vlgmr.msra.gmra.mxu1 %vm672_vm3, %v664_v36  ;;  %1380 = vmatmul.mubr.msk.bf16.vlgmr.msra.gmra.mxu0 %vm672_vm3, %v665_v37 }
 0x2f6   : > { %1390 = vmatpush3.bf16.msra.mxu0 %v846_v38  ;;  %1385 = vmatprep.mubr.msk.bf16.mxu1 %vm1833_vm1, %v1832_v8 }
 0x2f7   : > { %1391 = vmatprep.mubr.msk.bf16.mxu0 %vm1833_vm1, %v1832_v8  ;;  %1401 = vmatprep.subr.bf16.mxu0 %v1832_v8 }
 0x3b5   : > { %v713_v39 = vpop.f32.mrf.mxu1  ;;  %v759_v40 = vpop.f32.mrf.mxu0 }
 0x3b6   : > { %v765_v41 = vsel %vm672_vm3, %v713_v39, -inf  ;;  %v768_v42 = vsel %vm672_vm3, %v759_v40, -inf }
 0x3b7   : > { %766 = vmax.xlane.f32.xlu0 %v765_v41  ;;  %v1375_v43 = vpop.f32.mrf.mxu1  ;;  %769 = vmax.xlane.f32.xlu1 %v768_v42  ;;  %v1381_v44 = vpop.f32.mrf.mxu0 }
 0x3b8   : > { %v1551_v43 = vld [vmem:[%s2203_s7] sm:$0xff]  }
 0x3b9   : > { %v716_v45 = vpop.f32.mrf.mxu1  ;;  %v762_v46 = vpop.f32.mrf.mxu0 }
 0x3bb   : > { %v1376_v47 = vpop.f32.mrf.mxu1  ;;  %v1382_v48 = vpop.f32.mrf.mxu0 }
 0x3bc   : > { %v1324_v48 = vld [vmem:[#allocation11] ss:$0 sm:$0xff] }
 0x3c8   : > { %637 = vrot.lane.b32.xlu1 %v1340_v22, %s1838_s1  ;;  %s1309_s1 = sshll.u32 %s521_s22, 3 }
 0x3c9   : > { %s523_s29 = scalar_lea.vmem [#allocation16], %s1309_s1 }
 0x3ca   : > { %s1160_s23 = sshll.u32 %s523_s29, 4  ;;  %s2151_s23 = int_to_ptr.vmem [resolvable:$true] %s1160_s23 }
 0x3cb   : > { %s1730_s30 = scalar_lea.vmem %s2151_s23, 128  ;;  %p1737_p12 = scmp.lt.s32.totalorder %s2151_s23, %s1735_s14 }
 0x3cc   : > { %p1731_p0 = scmp.ne.s32.totalorder %s2151_s23, %s1730_s30  ;;  %p1738_p1 = scmp.lt.s32.totalorder %s1736_s2, %s1730_s30 }
 0x3ce   : > { %p1732_p7 = pnand %p1731_p0, %p2233_p6  ;;  %p1739_p2 = por %p1738_p1, %p1737_p12 }
 0x3d0   : > { %p1733_p9 = pneg %p1732_p7 }
 0x3d2   : > { %p1740_p8 = pnand %p1739_p2, %p1733_p9 }
 0x440   : > { %v767_v49 = vpop.xlane.xlu0 %766  ;;  %v770_v50 = vpop.xlane.xlu1 %769 }
 0x441   : > { %v777_v51 = vsub.f32 %v713_v39, %v767_v49  ;;  %v778_v52 = vsub.f32 %v759_v40, %v770_v50  ;;  %v772_v2 = vsub.f32 -inf, %v770_v50  ;;  %v771_v20 = vsub.f32 -inf, %v767_v49  ;;  %v1325_v50 = vld [vmem:[#allocation13] ss:$0 sm:$0xff] }
 0x443   : > { %v779_v53 = vmul.f32 1.442695, %v777_v51  ;;  %v781_v54 = vmul.f32 1.442695, %v778_v52  ;;  %v775_v3 = vmul.f32 1.442695, %v772_v2 }
 0x444   : > { %v638_v55 = vpop.permute.xlu1 %637  ;;  %v773_v21 = vmul.f32 1.442695, %v771_v20 }
 0x445   : > { %640 = vst.msk [vmem:[#allocation4] sm:$0xf] %vm627_vm2, %v638_v55  ;;  %1558 = vpow2.f32 %v779_v53  ;;  %v1553_v55 = vld [vmem:[%s2205_s9 + $0x10] sm:$0xff]  }
 0x446   : > { %1560 = vpow2.f32 %v781_v54  ;;  %v1552_v54 = vld [vmem:[%s2205_s9 + $0x18] sm:$0xff]  }
 0x447   : > { %1562 = vpow2.f32 %v775_v3 }
 0x44c   : > { %v670_v56 = vld [vmem:[#allocation4] sm:$0xf] }
 0x44d   : > { %v800_v57 = vsel %vm798_vm4, %v670_v56, 0  ;;  %v1554_v56 = vld [vmem:[%s2205_s9 + $0x8] sm:$0xff]  }
 0x44e   : > { %1384 = vmatpush3.bf16.msra.mxu1 %v800_v57  ;;  %v1555_v57 = vld [vmem:[%s2205_s9] sm:$0xff]  }
 0x44f   : > { %1395 = vmatprep.subr.bf16.mxu1 %v1832_v8 }
 0x452   : > { %v1559_v58 = vpop.eup %1558 }
 0x453   : > { %v785_v59 = vsel %vm672_vm3, %v1559_v58, 0.0  ;;  %v793_v60 = vpack.c.bf16 %v1559_v58, %v1559_v58  ;;  %v1561_v61 = vpop.eup %1560  ;;  %v1326_v58 = vld [vmem:[#allocation14] ss:$0 sm:$0xff] }
 0x454   : > { %786 = vadd.xlane.f32.xlu0 %v785_v59  ;;  %v788_v62 = vsel %vm672_vm3, %v1561_v61, 0.0  ;;  %v794_v63 = vpack.c.bf16 %v1561_v61, %v1561_v61  ;;  %v1563_v4 = vpop.eup %1562 }
 0x455   : > { %1386 = vmatmul.mubr.msk.bf16.vlgmr.msra.gmra.mxu1 %vm672_vm3, %v793_v60  ;;  %789 = vadd.xlane.f32.xlu1 %v788_v62  ;;  %v784_v6 = vmul.f32 0.0, %v1563_v4 }
 0x456   : > { %1397 = vmatprep.mubr.msk.bf16.mxu1 %vm1833_vm1, %v1832_v8  ;;  %1392 = vmatmul.mubr.msk.bf16.vlgmr.msra.gmra.mxu0 %vm672_vm3, %v794_v63 }
 0x457   : > { %1405 = vmatprep.mubr.msk.bf16.mxu0 %vm1833_vm1, %v1832_v8  ;;  %1396 = vmatpush3.bf16.msra.mxu1 %v1549_v1 }
 0x458   : > { %1409 = vmatprep.subr.bf16.mxu1 %v1832_v8 }
 0x4dd   : > { %v787_v23 = vpop.xlane.xlu0 %786 }
 0x4de   : > { %v790_v5 = vpop.xlane.xlu1 %789 }
 0x4df   : > { %v792_v7 = vadd.f32 %v790_v5, %v784_v6 }
 0x4e1   : > { %1564 = vrcp.f32 %v792_v7 }
 0x4e2   : > { %1566 = vpow2.f32 %v773_v21 }
 0x4ee   : > { %v1565_v13 = vpop.eup %1564 }
 0x4ef   : > { %v1567_v22 = vpop.eup %1566 }
 0x4f0   : > { %v783_v24 = vmul.f32 0.0, %v1567_v22 }
 0x4f2   : > { %v791_v25 = vadd.f32 %v787_v23, %v783_v24 }
 0x4f4   : > { %1568 = vrcp.f32 %v791_v25 }
 0x501   : > { %v1569_v27 = vpop.eup %1568 }
 0x515   : > { %v836_v9 = vpop.f32.mrf.mxu1 }
 0x516   : > { %v882_v10 = vpop.f32.mrf.mxu0  ;;  %v888_v26 = vadd.f32 %v836_v9, %v783_v24 }
 0x517   : > { %v1387_v11 = vpop.f32.mrf.mxu1  ;;  %v889_v12 = vadd.f32 %v882_v10, %v784_v6 }
 0x518   : > { %v1393_v14 = vpop.f32.mrf.mxu0  ;;  %v892_v28 = vmul.f32 %v1569_v27, %v888_v26  ;;  %v1330_v11 = vld [vmem:[%s2206_s10] ss:$0 sm:$0xff] }
 0x519   : > { %v839_v15 = vpop.f32.mrf.mxu1  ;;  %v893_v16 = vmul.f32 %v1565_v13, %v889_v12 }
 0x51a   : > { %v885_v17 = vpop.f32.mrf.mxu0 }
 0x51b   : > { %v1388_v18 = vpop.f32.mrf.mxu1  ;;  %895 = vrot.lane.b32.xlu0 %v893_v16, %s1839_s24 }
 0x51c   : > { %v1394_v19 = vpop.f32.mrf.mxu0 }
 0x58d   : > { %v896_v29 = vpop.permute.xlu0 %895 }
 0x58e   : > { %v898_v30 = vsel %vm672_vm3, %v892_v28, %v896_v29 }
 0x58f   : > { %v899_v31 = vpack.c.bf16 %v898_v30, %v898_v30 }
 0x591   : > { %1398 = vmatmul.mubr.msk.bf16.vlgmr.msra.gmra.mxu1 %vm908_vm5, %v899_v31 }
 0x592   : > { %1417 = vmatprep.mubr.msk.bf16.mxu1 %vm1833_vm1, %v1832_v8  ;;  %1410 = vmatpush3.bf16.msra.mxu1 %v1552_v54 }
 0x593   : > { %1411 = vmatprep.subr.bf16.mxu1 %v1832_v8 }
 0x596   : > { %1412 = vmatpush3.bf16.msra.mxu1 %v1553_v55 }
 0x597   : > { %1413 = vmatprep.subr.bf16.mxu1 %v1832_v8 }
 0x59a   : > { %1414 = vmatpush3.bf16.msra.mxu1 %v1554_v56 }
 0x59b   : > { %1415 = vmatprep.subr.bf16.mxu1 %v1832_v8 }
 0x59e   : > { %1416 = vmatpush3.bf16.msra.mxu1 %v1555_v57 }
 0x651   : > { %v946_v32 = vpop.f32.mrf.mxu1 }
 0x652   : > { %v2111_v33 = vadd.f32 %v946_v32, %v2053_v0  ;;  %v1550_v0 = vld [vmem:[%s2203_s7 + $0x8] sm:$0xff]  }
 0x653   : > { %v1399_v34 = vpop.f32.mrf.mxu1  ;;  %1402 = vmatpush3.bf16.msra.mxu0 %v1550_v0 }
 0x654   : > { %v955_v35 = vsel %vm536_vm0, %v2111_v33, 0.0  ;;  %1403 = vmatprep.subr.bf16.mxu0 %v1832_v8 }
 0x655   : > { %956 = vadd.xlane.f32.xlu0 %v955_v35  ;;  %v949_v36 = vpop.f32.mrf.mxu1 }
 0x657   : > { %v1400_v37 = vpop.f32.mrf.mxu1  ;;  %1404 = vmatpush3.bf16.msra.mxu0 %v1551_v43 }
 0x6de   : > { %v957_v38 = vpop.xlane.xlu0 %956 }
 0x6df   : > { %v959_v39 = vmul.f32 0.03125, %v957_v38 }
 0x6e1   : > { %v960_v40 = vsub.f32 %v2111_v33, %v959_v39 }
 0x6e3   : > { %v961_v41 = vmul.f32 %v960_v40, %v960_v40 }
 0x6e5   : > { %v962_v42 = vsel %vm536_vm0, %v961_v41, 0.0 }
 0x6e6   : > { %963 = vadd.xlane.f32.xlu1 %v962_v42 }
 0x76f   : > { %v964_v44 = vpop.xlane.xlu1 %963 }
 0x770   : > { %v965_v45 = vmul.f32 0.03125, %v964_v44 }
 0x772   : > { %v966_v46 = vadd.f32 1e-05, %v965_v45 }
 0x774   : > { %1570 = vrsqrt.f32 %v966_v46 }
 0x781   : > { %v1571_v47 = vpop.eup %1570 }
 0x782   : > { %v968_v49 = vmul.f32 %v1571_v47, %v960_v40 }
 0x784   : > { %v975_v51 = vmul.f32 %v1324_v48, %v968_v49 }
 0x786   : > { %v982_v52 = vadd.f32 %v1325_v50, %v975_v51 }
 0x788   : > { %v983_v53 = vpack.c.bf16 %v982_v52, %v982_v52 }
 0x78a   : > { %1406 = vmatmul.mubr.msk.bf16.vlgmr.msra.gmra.mxu0 %vm536_vm0, %v983_v53 }
 0x84a   : > { %v1044_v59 = vpop.f32.mrf.mxu0 }
 0x84b   : > { %v1045_v60 = vadd.f32 %v1326_v58, %v1044_v59 }
 0x84c   : > { %v1407_v61 = vpop.f32.mrf.mxu0 }
 0x84d   : > { %v1051_v62 = vmul.f32 0.044715, %v1045_v60  ;;  %v1050_v7 = vmul.f32 0.5, %v1045_v60 }
 0x84e   : > { %v1047_v63 = vpop.f32.mrf.mxu0 }
 0x84f   : > { %v1052_v1 = vmul.f32 %v1051_v62, %v1045_v60 }
 0x850   : > { %v1408_v2 = vpop.f32.mrf.mxu0 }
 0x851   : > { %v1053_v3 = vmul.f32 %v1052_v1, %v1045_v60 }
 0x853   : > { %v1054_v4 = vadd.f32 %v1053_v3, %v1045_v60 }
 0x855   : > { %v1055_v5 = vmul.f32 0.7978846, %v1054_v4 }
 0x857   : > { %1572 = vtanh.f32 %v1055_v5 }
 0x864   : > { %v1573_v6 = vpop.eup %1572 }
 0x865   : > { %v1057_v9 = vadd.f32 1.0, %v1573_v6 }
 0x867   : > { %v1058_v10 = vmul.f32 %v1057_v9, %v1050_v7 }
 0x869   : > { %v1059_v8 = vpack.c.bf16 %v1058_v10, %v1058_v10 }
 0x86b   : > { %1418 = vmatmul.mubr.msk.bf16.vlgmr.msra.gmra.mxu1 %vm1099_vm6, %v1059_v8 }
 0x92b   : > { %v1137_v12 = vpop.f32.mrf.mxu1 }
 0x92c   : > { %v1138_v13 = vadd.f32 %v1330_v11, %v1137_v12 }
 0x92d   : > { %v1419_v14 = vpop.f32.mrf.mxu1 }
 0x92e   : > { %v1143_v15 = vadd.f32 %v1138_v13, %v2111_v33 }
 0x92f   : > { %v1140_v16 = vpop.f32.mrf.mxu1 }
 0x930   : > { %1144 = vst.msk [vmem:[%s523_s29] sm:$0xff] %vm536_vm0, %v1143_v15 }
 0x931   : > { %v1420_v17 = vpop.f32.mrf.mxu1 }
 0x932   : > { %1743 = shalt.err (!%p1740_p8)
}
 0x933   : > { %s1744_s27 = scalar_lea.hbm %s2149_s19, 128  ;;  %s1748_s24 = scalar_lea.hbm %s2209_s13, 256 }
 0x934   : > { %p1745_p3 = scmp.ne.s32.totalorder %s2149_s19, %s1744_s27  ;;  %p1749_p10 = scmp.lt.s32.totalorder %s2149_s19, %s2209_s13 }
 0x935   : > { %p1750_p11 = scmp.lt.s32.totalorder %s1748_s24, %s1744_s27 }
 0x936   : > { %p1746_p5 = pnand %p1745_p3, %p2233_p6 }
 0x937   : > { %p1751_p13 = por %p1750_p11, %p1749_p10 }
 0x938   : > { %p1747_p4 = pneg %p1746_p5 }
 0x93a   : > { %p1752_p0 = pnand %p1751_p13, %p1747_p4 }
 0x93c   : > { %1755 = shalt.err (!%p1752_p0)
}
 0x93d   : > { %1445 = dma.vmem_to_hbm [thread:$0]  (%p2233_p6), %s2151_s23, 128, %s2149_s19, %s1146_s28  }
 0x93e PF: > { %p1482_p7 = scmp.ge.s32.totalorder %s1822_s12, 2  ;;  %s1172_s29 = sand.u32 1, %s1802_s25  }
 0x93f   : > { %p2234_p9 = scmp.ne.s32.totalorder %s2223_s18, 0  ;;  %s1173_s11 = scalar_lea.sflag [#allocation7], %s1172_s29 }
 0x941   : > { %p1467_p12 = pnand %p1482_p7, %p2234_p9 }
 0x943   : > { %p1468_p1 = pneg %p1467_p12 }
 0x945   : > { %1797 = dma.done.wait (%p1468_p1), %s1173_s11, 128  }
 0x946   : > { %1799 = vsyncadd (%p1468_p1), %s1173_s11, 4294967168  ;;  %s30_s12 = sadd.s32 1, %s1822_s12   ;;  %s2235_s16 = sld [smem:[#allocation22_spill]] }
 0x947   : > { %p27_p2 = scmp.ge.s32.totalorder %s30_s12, 4   ;;  %s2236_s27 = sld [smem:[#allocation25_spill]] }
 0x948   : > { %s2237_s28 = sld [smem:[#allocation23_spill]]  ;;  %s2239_s25 = smov %s1806_s26 }
 0x949   : > { %s2238_s11 = sld [smem:[#allocation24_spill]]  ;;  %29 = sbr.rel (!%p27_p2) target bundleno = 11 (0xb), region = 141 }
 0x94c   : > { %s2240_s26 = smov %s2235_s16 }
 0x94e   :  { %1178 = vsyncpa [#allocation6], 1 }
 0x94f   :  { %1180 = vsyncpa [#allocation6 + $0x1], 1 }
 0x950   :  { %1181 = vsyncpa [#allocation9], 1 }
 0x951   :  { %1182 = vsyncpa [#allocation12], 1 }
 0x952   :  { %1183 = vsyncpa [#allocation15], 1 }
 0x953   :  { %1184 = vsyncpa [#allocation7], 1 }
 0x954   :  { %1186 = vsyncpa [#allocation7 + $0x1], 1 }

// kernel: tpu_custom_call.1
= control target key start
LH: loop header
LB: loop body
LE: loop exit
PB: predicated region body
PF: predicated region fallthrough
CT: control target
= control target key end

     0   :  { %s2196_s0 = inlined_call_operand.vmem [shape: f32[2,8,32], index: 0, kind: input, shape index: {}]   ;;  %s2197_s1 = inlined_call_operand.hbm [shape: f32[1,32], index: 1, kind: input, shape index: {}]   ;;  %s2198_s2 = inlined_call_operand.hbm [shape: f32[1,32], index: 2, kind: input, shape index: {}]   ;;  %s2199_s3 = inlined_call_operand.vmem [shape: bf16[32,48], index: 3, kind: input, shape index: {}]   ;;  %s2200_s4 = inlined_call_operand.hbm [shape: bf16[16,32], index: 4, kind: input, shape index: {}]   ;;  %s2201_s5 = inlined_call_operand.hbm [shape: f32[1,32], index: 5, kind: input, shape index: {}]   ;;  %s2202_s6 = inlined_call_operand.hbm [shape: f32[1,32], index: 6, kind: input, shape index: {}]   ;;  %s2203_s7 = inlined_call_operand.vmem [shape: bf16[32,64], index: 7, kind: input, shape index: {}]   ;;  %s2204_s8 = inlined_call_operand.hbm [shape: f32[1,64], index: 8, kind: input, shape index: {}]   ;;  %s2205_s9 = inlined_call_operand.vmem [shape: bf16[64,32], index: 9, kind: input, shape index: {}]   ;;  %s2206_s10 = inlined_call_operand.vmem [shape: f32[1,32], index: 10, kind: input, shape index: {}]   ;;  %s2207_s11 = inlined_call_operand.vmem [shape: f32[1,32], index: 11, kind: input, shape index: {}]   ;;  %s2208_s12 = inlined_call_operand.vmem [shape: f32[1,32], index: 12, kind: input, shape index: {}]   ;;  %s2209_s13 = inlined_call_operand.hbm [shape: f32[2,8,32], index: 13, kind: output, shape index: {}]  }
   0x1   :  { %2217 = sst [smem:[#allocation26_spill]] %s2197_s1 }
   0x2   :  { %2218 = sst [smem:[#allocation27_spill]] %s2198_s2 }
   0x3   :  { %18 = vsyncpa [#allocation6], 0 }
   0x4   :  { %19 = vsyncpa [#allocation9], 0 }
   0x5   :  { %20 = vsyncpa [#allocation12], 0 }
   0x6   :  { %21 = vsyncpa [#allocation15], 0 }
   0x7   :  { %22 = vsyncpa [#allocation7], 0 }
   0x8   :  { %24 = vsyncpa [#allocation7 + $0x1], 0  ;;  %s1911_s25 = smov 0   ;;  %s1913_s26 = smov 0  }
   0x9   :  { %s1915_s27 = smov 0   ;;  %s1917_s28 = smov 0  }
   0xa   :  { %s1919_s11 = smov 0   ;;  %s1921_s12 = smov 0  }
   0xb LB: > { %2219 = sst [smem:[#allocation22_spill]] %s1810_s27  ;;  %s1292_s29 = sadd.s32 4294967295, %s1822_s12   ;;  %s1822_s12 = sphi %s1921_s12, %s30_s12   ;;  %s1818_s11 = sphi %s1919_s11, %s2238_s11   ;;  %s1814_s28 = sphi %s1917_s28, %s2237_s28   ;;  %s1810_s27 = sphi %s1915_s27, %s2236_s27   ;;  %s1806_s26 = sphi %s1913_s26, %s2240_s26   ;;  %s1802_s25 = sphi %s1911_s25, %s2239_s25  }
   0xc   : > { %2220 = sst [smem:[#allocation23_spill]] %s1818_s11  ;;  %s1293_s30 = sadd.s32 4294967294, %s1822_s12  }
   0xd   : > { %s42_s14 = sadd.s32 1, %s1818_s11  ;;  %s329_s15 = sadd.s32 1, %s1810_s27 }
   0xe   : > { %p44_p0 = scmp.ge.s32.totalorder %s42_s14, 2  ;;  %p339_p1 = scmp.ne.s32.totalorder %s1810_s27, %s1806_s26 }
   0xf   : > { %p340_p2 = scmp.eq.s32.totalorder %s1292_s29, 1  ;;  %p345_p3 = scmp.ne.s32.totalorder %s1806_s26, %s1802_s25 }
  0x10   : > { %s2242_s14 = smov (%p44_p0, %s42_s14), 0  ;;  %p346_p5 = scmp.eq.s32.totalorder %s1293_s30, 1 }
  0x11   : > { %2221 = sst [smem:[#allocation24_spill]] %s2242_s14  ;;  %p1951_p4 = por %p340_p2, %p339_p1 }
  0x12   : > { %s324_s17 = ssub.s32 %s1818_s11, %s2242_s14  ;;  %p1294_p6 = scmp.ge.s32.totalorder %s1822_s12, 1 }
  0x13   : > { %s2222_s16 = scalar_select %p1951_p4, 1, 0 }
  0x14   : > { %p327_p7 = scmp.eq.s32.totalorder %s324_s17, 0  ;;  %p1958_p8 = por %p346_p5, %p345_p3 }
  0x15   : > { %p353_p9 = scmp.lt.s32.totalorder %s1822_s12, 3  ;;  %p1970_p11 = scmp.eq.s32.totalorder %s1292_s29, 0 }
  0x16   : > { %s2223_s18 = scalar_select %p1958_p8, 1, 0 }
  0x17   : > { %s1964_s19 = scalar_select %p327_p7, %s1810_s27, %s329_s15  }
  0x18   : > { %p1966_p10 = pnand %p1294_p6, %p353_p9  ;;  %s1824_s22 = smov [#allocation8]  }
  0x19   : > { %2224 = sst [smem:[#allocation25_spill]] %s1964_s19  ;;  %s377_s23 = sshll.u32 %s1824_s22, 4  ;;  %s378_s23 = int_to_ptr.vmem [resolvable:$true] %s377_s23 }
  0x1a   : > { %s2225_s20 = scalar_select %p1966_p10, 1, 0 }
  0x1b   : > { %s2226_s21 = scalar_select %p1970_p11, 1, 0 }
  0x1c   : > { %p1447_p12 = pneg %p1966_p10  ;;  %s1825_s24 = smov [#allocation11]  }
  0x1d   : > { %s404_s30 = sshll.u32 %s1825_s24, 4  ;;  %s1585_s17 = scalar_lea.vmem %s378_s23, 16  ;;  %s405_s30 = int_to_ptr.vmem [resolvable:$true] %s404_s30 }
  0x1e   : > { %p1978_p13 = pnand %p1970_p11, %p1447_p12  ;;  %p1586_p1 = scmp.ne.s32.totalorder %s378_s23, %s1585_s17 }
  0x1f   : > { %s1592_s22 = scalar_lea.vmem %s378_s23, 32  ;;  %p1593_p5 = scmp.lt.s32.totalorder %s378_s23, %s378_s23 }
  0x20   : > { %p1984_p0 = pneg %p1978_p13  ;;  %p1594_p6 = scmp.lt.s32.totalorder %s1592_s22, %s1585_s17 }
  0x22   : > { %p1588_p2 = pnand %p1586_p1, %p1984_p0  ;;  %p1595_p7 = por %p1594_p6, %p1593_p5 }
  0x24   : > { %p1589_p3 = pneg %p1588_p2 }
  0x26   : > { %p1596_p9 = pnand %p1595_p7, %p1589_p3 }
  0x28   : > { %1599 = shalt.err (!%p1596_p9)
}
  0x29   : > { %s2229_s2 = sld [smem:[#allocation27_spill]]  ;;  %s1611_s11 = scalar_lea.vmem %s405_s30, 16 }
  0x2a   : > { %p1612_p12 = scmp.ne.s32.totalorder %s405_s30, %s1611_s11  ;;  %s1618_s19 = scalar_lea.vmem %s405_s30, 32 }
  0x2b   : > { %p1619_p1 = scmp.lt.s32.totalorder %s405_s30, %s405_s30  ;;  %p1620_p2 = scmp.lt.s32.totalorder %s1618_s19, %s1611_s11 }
  0x2c   : > { %p1614_p8 = pnand %p1612_p12, %p1984_p0 }
  0x2d   : > { %p1621_p11 = por %p1620_p2, %p1619_p1 }
  0x2e   : > { %p1615_p4 = pneg %p1614_p8 }
  0x2f   : > { %1453 = dma.hbm_to_vmem [thread:$0]  (!%p1978_p13), %s2229_s2, 16, %s378_s23, [#allocation9]  }
  0x30   : > { %p1622_p10 = pnand %p1621_p11, %p1615_p4 }
  0x32   : > { %1625 = shalt.err (!%p1622_p10)
}
  0x33   : > { %1459 = dma.hbm_to_vmem [thread:$0]  (!%p1978_p13), %s2201_s5, 16, %s405_s30, [#allocation12]  }
  0x34   : > { %s1826_s14 = smov [#allocation5]   ;;  %s1827_s24 = smov [#allocation10]  }
  0x35   : > { %s366_s23 = sshll.u32 %s1826_s14, 4  ;;  %s390_s2 = sshll.u32 %s1827_s24, 4  ;;  %s367_s23 = int_to_ptr.vmem [resolvable:$true] %s366_s23  ;;  %s391_s2 = int_to_ptr.vmem [resolvable:$true] %s390_s2 }
  0x36   : > { %s1637_s27 = scalar_lea.vmem %s367_s23, 16  ;;  %s1644_s11 = scalar_lea.vmem %s367_s23, 32 }
  0x37   : > { %p1638_p8 = scmp.ne.s32.totalorder %s367_s23, %s1637_s27  ;;  %p1645_p4 = scmp.lt.s32.totalorder %s367_s23, %s367_s23 }
  0x38   : > { %p1646_p10 = scmp.lt.s32.totalorder %s1644_s11, %s1637_s27 }
  0x39   : > { %p1640_p3 = pnand %p1638_p8, %p1984_p0 }
  0x3a   : > { %p1647_p11 = por %p1646_p10, %p1645_p4 }
  0x3b   : > { %p1641_p5 = pneg %p1640_p3 }
  0x3d   : > { %p1648_p6 = pnand %p1647_p11, %p1641_p5 }
  0x3f   : > { %1651 = shalt.err (!%p1648_p6)
}
  0x40   : > { %s2230_s1 = sld [smem:[#allocation26_spill]]  ;;  %s1663_s17 = scalar_lea.vmem %s391_s2, 128 }
  0x41   : > { %p1664_p7 = scmp.ne.s32.totalorder %s391_s2, %s1663_s17  ;;  %p1671_p1 = scmp.lt.s32.totalorder %s391_s2, %s391_s2 }
  0x42   : > { %p1672_p2 = scmp.lt.s32.totalorder %s1663_s17, %s1663_s17 }
  0x43   : > { %p1666_p9 = pnand %p1664_p7, %p1984_p0 }
  0x44   : > { %p1673_p8 = por %p1672_p2, %p1671_p1 }
  0x45   : > { %p1667_p12 = pneg %p1666_p9 }
  0x46   : > { %1450 = dma.hbm_to_vmem [thread:$0]  (!%p1978_p13), %s2230_s1, 16, %s367_s23, [#allocation6]  }
  0x47   : > { %p1674_p3 = pnand %p1673_p8, %p1667_p12 }
  0x49   : > { %1677 = shalt.err (!%p1674_p3)
}
  0x4a   : > { %s1828_s27 = smov 64   ;;  %s1829_s22 = smov 4  }
  0x4b   : > { %1456 = dma.hbm_to_vmem [thread:$0]  (!%p1978_p13), %s2200_s4, 128, %s391_s2, [#allocation9], %s1828_s27, %s1828_s27, %s1829_s22  }
  0x4c   : > { %s1830_s23 = smov [#allocation13]   ;;  %s1831_s19 = smov [#allocation14]  }
  0x4d   : > { %s415_s11 = sshll.u32 %s1830_s23, 4  ;;  %s429_s30 = sshll.u32 %s1831_s19, 4  ;;  %s416_s11 = int_to_ptr.vmem [resolvable:$true] %s415_s11  ;;  %s430_s30 = int_to_ptr.vmem [resolvable:$true] %s429_s30 }
  0x4e   : > { %s1689_s1 = scalar_lea.vmem %s416_s11, 16  ;;  %s1696_s17 = scalar_lea.vmem %s416_s11, 32 }
  0x4f   : > { %p1690_p5 = scmp.ne.s32.totalorder %s416_s11, %s1689_s1  ;;  %p1697_p11 = scmp.lt.s32.totalorder %s416_s11, %s416_s11 }
  0x50   : > { %p1698_p6 = scmp.lt.s32.totalorder %s1696_s17, %s1689_s1 }
  0x51   : > { %p1692_p4 = pnand %p1690_p5, %p1984_p0 }
  0x52   : > { %p1699_p7 = por %p1698_p6, %p1697_p11 }
  0x53   : > { %p1693_p10 = pneg %p1692_p4 }
  0x55   : > { %p1700_p9 = pnand %p1699_p7, %p1693_p10 }
  0x57   : > { %1703 = shalt.err (!%p1700_p9)
}
  0x58   : > { %1462 = dma.hbm_to_vmem [thread:$0]  (!%p1978_p13), %s2202_s6, 16, %s416_s11, [#allocation12]  }
  0x59   : > { %s1715_s27 = scalar_lea.vmem %s430_s30, 16  ;;  %s1722_s22 = scalar_lea.vmem %s430_s30, 32 }
  0x5a   : > { %p1716_p12 = scmp.ne.s32.totalorder %s430_s30, %s1715_s27  ;;  %p1723_p8 = scmp.lt.s32.totalorder %s430_s30, %s430_s30 }
  0x5b   : > { %p1724_p3 = scmp.lt.s32.totalorder %s1722_s22, %s1715_s27 }
  0x5c   : > { %p1718_p1 = pnand %p1716_p12, %p1984_p0 }
  0x5d   : > { %p1725_p5 = por %p1724_p3, %p1723_p8 }
  0x5e   : > { %p1719_p2 = pneg %p1718_p1 }
  0x60   : > { %p1726_p4 = pnand %p1725_p5, %p1719_p2 }
  0x62   : > { %1729 = shalt.err (!%p1726_p4)
}
  0x63   : > { %1465 = dma.hbm_to_vmem [thread:$0]  (!%p1978_p13), %s2204_s8, 16, %s430_s30, [#allocation15]  }
  0x64   : > { %p2231_p10 = scmp.ne.s32.totalorder %s2225_s20, 0 }
  0x65   : > { %p2232_p11 = scmp.ne.s32.totalorder (!%p2231_p10), %s2226_s21, 0 }
  0x66   : > { %461 = sbr.rel (%p2231_p10) target bundleno = 2366 (0x93e), region = 72 }
  0x6b   : > { %1781 = dma.done.wait (%p2232_p11), [#allocation6], 16  }
  0x6c   : > { %1783 = vsyncadd (%p2232_p11), [#allocation6], 4294967280 }
  0x6d   : > { %1785 = dma.done.wait (%p2232_p11), [#allocation9], 144  }
  0x6e   : > { %1787 = vsyncadd (%p2232_p11), [#allocation9], 4294967152 }
  0x6f   : > { %1789 = dma.done.wait (%p2232_p11), [#allocation12], 32  }
  0x70   : > { %1791 = vsyncadd (%p2232_p11), [#allocation12], 4294967264 }
  0x71   : > { %1793 = dma.done.wait (%p2232_p11), [#allocation15], 16  }
  0x72   : > { %1795 = vsyncadd (%p2232_p11), [#allocation15], 4294967280  ;;  %p524_p13 = scmp.lt.s32.totalorder %s1814_s28, 1  ;;  %vm536_vm0 = vcmask 261120   ;;  %v1547_v7 = vld [vmem:[%s2199_s3 + $0x8] sm:$0xff]   ;;  %v1832_v8 = vmov 0.0  }
  0x73   : > { %1363 = vmatprep.subr.bf16.mxu0 %v1832_v8  ;;  %vm1833_vm1 = vmmov 0   ;;  %v1548_v9 = vld [vmem:[%s2199_s3] sm:$0xff]   ;;  %1371 = vmatprep.subr.bf16.mxu1 %v1832_v8  ;;  %v1311_v14 = vld [vmem:[#allocation5] ss:$0 sm:$0xff]  ;;  %v1312_v16 = vld [vmem:[#allocation8] ss:$0 sm:$0xff] }
  0x74   : > { %s525_s20 = scalar_select %p524_p13, %s1814_s28, 1  ;;  %1367 = vmatprep.mubr.msk.bf16.mxu0 %vm1833_vm1, %v1832_v8  ;;  %1364 = vmatpush3.bf16.msra.mxu0 %v1547_v7  ;;  %vm627_vm2 = vcmask 60416   ;;  %vm672_vm3 = vcmask 64512   ;;  %vm798_vm4 = vcmask 1043456   ;;  %vm908_vm5 = vcmask 130048  }
  0x75   : > { %1365 = vmatprep.subr.bf16.mxu0 %v1832_v8  ;;  %1373 = vmatprep.mubr.msk.bf16.mxu1 %vm1833_vm1, %v1832_v8  ;;  %s1834_s14 = smov 112   ;;  %s1835_s2 = smov 104   ;;  %vm1099_vm6 = vcmask 523264  }
  0x76   : > { %s1310_s15 = sshll.u32 %s525_s20, 3  ;;  %s1836_s27 = smov 88  }
  0x77   : > { %s527_s11 = scalar_lea.vmem %s2196_s0, %s1310_s15  ;;  %s1837_s22 = smov 120  }
  0x78   : > { %v2053_v0 = vld [vmem:[%s527_s11] sm:$0xff]  ;;  %1366 = vmatpush3.bf16.msra.mxu0 %v1548_v9  ;;  %s1838_s1 = smov 96   ;;  %s1839_s24 = smov 8  }
  0x79   : > { %v537_v1 = vsel %vm536_vm0, %v2053_v0, 0.0  ;;  %1377 = vmatprep.subr.bf16.mxu0 %v1832_v8  ;;  %s1337_s15 = sshll.u32 %s1814_s28, 7  ;;  %p2233_p6 = scmp.ne.s32.totalorder %s2222_s16, 0 }
  0x7a   : > { %538 = vadd.xlane.f32.xlu0 %v537_v1  ;;  %v1549_v1 = vld [vmem:[#allocation10] sm:$0xff]   ;;  %s2149_s19 = scalar_lea.hbm %s2209_s13, %s1337_s15  ;;  %s1840_s17 = smov [#allocation16]  }
 0x103   : > { %v539_v2 = vpop.xlane.xlu0 %538 }
 0x104   : > { %v541_v3 = vmul.f32 0.03125, %v539_v2 }
 0x106   : > { %v542_v4 = vsub.f32 %v2053_v0, %v541_v3 }
 0x108   : > { %v543_v5 = vmul.f32 %v542_v4, %v542_v4 }
 0x10a   : > { %v544_v6 = vsel %vm536_vm0, %v543_v5, 0.0 }
 0x10b   : > { %545 = vadd.xlane.f32.xlu0 %v544_v6 }
 0x194   : > { %v546_v10 = vpop.xlane.xlu0 %545 }
 0x195   : > { %v547_v11 = vmul.f32 0.03125, %v546_v10 }
 0x197   : > { %v548_v12 = vadd.f32 1e-05, %v547_v11 }
 0x199   : > { %1556 = vrsqrt.f32 %v548_v12 }
 0x1a6   : > { %v1557_v13 = vpop.eup %1556 }
 0x1a7   : > { %v550_v15 = vmul.f32 %v1557_v13, %v542_v4 }
 0x1a9   : > { %v557_v17 = vmul.f32 %v1311_v14, %v550_v15 }
 0x1ab   : > { %v564_v18 = vadd.f32 %v1312_v16, %v557_v17 }
 0x1ad   : > { %v565_v19 = vpack.c.bf16 %v564_v18, %v564_v18 }
 0x1af   : > { %1368 = vmatmul.mubr.msk.bf16.vlgmr.msra.gmra.mxu0 %vm536_vm0, %v565_v19 }
 0x1b0   : > { %1379 = vmatprep.mubr.msk.bf16.mxu0 %vm1833_vm1, %v1832_v8 }
 0x26f   : > { %v619_v20 = vpop.f32.mrf.mxu0 }
 0x270   : > { %v625_v21 = vmul.f32 0.35355338, %v619_v20  ;;  %v1340_v22 = vpack.c.bf16 %v619_v20, %v619_v20 }
 0x271   : > { %v1369_v23 = vpop.f32.mrf.mxu0 }
 0x272   : > { %v626_v24 = vpack.c.bf16 %v625_v21, %v625_v21  ;;  %633 = vrot.lane.b32.xlu0 %v1340_v22, %s1834_s14  ;;  %649 = vrot.lane.b32.xlu1 %v1340_v22, %s1835_s2  ;;  %s1734_s14 = sshll.u32 %s1840_s17, 4  ;;  %s1735_s14 = int_to_ptr.vmem [resolvable:$false] %s1734_s14 }
 0x273   : > { %v622_v25 = vpop.f32.mrf.mxu0  ;;  %s1736_s2 = scalar_lea.vmem %s1735_s14, 256 }
 0x274   : > { %628 = vst.msk [vmem:[#allocation2] sm:$0xf] %vm627_vm2, %v626_v24 }
 0x275   : > { %v1370_v26 = vpop.f32.mrf.mxu0 }
 0x276   : > { %654 = vrot.lane.b32.xlu0 %v1340_v22, %s1836_s27  ;;  %644 = vrot.lane.b32.xlu1 %v626_v24, %s1837_s22  ;;  %s521_s22 = sand.u32 1, %s1806_s26  }
 0x277   : > { %s1146_s28 = scalar_lea.sflag [#allocation7], %s521_s22 }
 0x27b   : > { %v664_v36 = vld [vmem:[#allocation2] sm:$0xf] }
 0x2e4   : > { %v634_v27 = vpop.permute.xlu0 %633  ;;  %v650_v28 = vpop.permute.xlu1 %649 }
 0x2e5   : > { %636 = vst.msk [vmem:[#allocation3] sm:$0xf] %vm627_vm2, %v634_v27  ;;  %653 = vst.msk [vmem:[#allocation3 + $0x4] sm:$0xf] %vm627_vm2, %v650_v28 }
 0x2e8   : > { %v655_v29 = vpop.permute.xlu0 %654  ;;  %v645_v30 = vpop.permute.xlu1 %644 }
 0x2e9   : > { %658 = vst.msk [vmem:[#allocation4 + $0x4] sm:$0xf] %vm627_vm2, %v655_v29  ;;  %648 = vst.msk [vmem:[#allocation2 + $0x4] sm:$0xf] %vm627_vm2, %v645_v30 }
 0x2ec   : > { %v668_v31 = vld [vmem:[#allocation3] sm:$0xf]  ;;  %v669_v32 = vld [vmem:[#allocation3 + $0x4] sm:$0xf] }
 0x2ed   : > { %v677_v33 = vsel %vm672_vm3, %v668_v31, 0  ;;  %v723_v34 = vsel %vm672_vm3, %v669_v32, 0 }
 0x2ee   : > { %1372 = vmatpush3.bf16.xpose.msra.mxu1 %v677_v33  ;;  %1378 = vmatpush3.bf16.xpose.msra.mxu0 %v723_v34 }
 0x2ef   : > { %1389 = vmatprep.subr.bf16.mxu0 %v1832_v8  ;;  %1383 = vmatprep.subr.bf16.mxu1 %v1832_v8 }
 0x2f0   : > { %v671_v35 = vld [vmem:[#allocation4 + $0x4] sm:$0xf]  ;;  %v665_v37 = vld [vmem:[#allocation2 + $0x4] sm:$0xf] }
 0x2f1   : > { %v846_v38 = vsel %vm798_vm4, %v671_v35, 0 }
 0x2f5   : > { %1374 = vmatmul.mubr.msk.bf16.vlgmr.msra.gmra.mxu1 %vm672_vm3, %v664_v36  ;;  %1380 = vmatmul.mubr.msk.bf16.vlgmr.msra.gmra.mxu0 %vm672_vm3, %v665_v37 }
 0x2f6   : > { %1390 = vmatpush3.bf16.msra.mxu0 %v846_v38  ;;  %1385 = vmatprep.mubr.msk.bf16.mxu1 %vm1833_vm1, %v1832_v8 }
 0x2f7   : > { %1391 = vmatprep.mubr.msk.bf16.mxu0 %vm1833_vm1, %v1832_v8  ;;  %1401 = vmatprep.subr.bf16.mxu0 %v1832_v8 }
 0x3b5   : > { %v713_v39 = vpop.f32.mrf.mxu1  ;;  %v759_v40 = vpop.f32.mrf.mxu0 }
 0x3b6   : > { %v765_v41 = vsel %vm672_vm3, %v713_v39, -inf  ;;  %v768_v42 = vsel %vm672_vm3, %v759_v40, -inf }
 0x3b7   : > { %766 = vmax.xlane.f32.xlu0 %v765_v41  ;;  %v1375_v43 = vpop.f32.mrf.mxu1  ;;  %769 = vmax.xlane.f32.xlu1 %v768_v42  ;;  %v1381_v44 = vpop.f32.mrf.mxu0 }
 0x3b8   : > { %v1551_v43 = vld [vmem:[%s2203_s7] sm:$0xff]  }
 0x3b9   : > { %v716_v45 = vpop.f32.mrf.mxu1  ;;  %v762_v46 = vpop.f32.mrf.mxu0 }
 0x3bb   : > { %v1376_v47 = vpop.f32.mrf.mxu1  ;;  %v1382_v48 = vpop.f32.mrf.mxu0 }
 0x3bc   : > { %v1324_v48 = vld [vmem:[#allocation11] ss:$0 sm:$0xff] }
 0x3c8   : > { %637 = vrot.lane.b32.xlu1 %v1340_v22, %s1838_s1  ;;  %s1309_s1 = sshll.u32 %s521_s22, 3 }
 0x3c9   : > { %s523_s29 = scalar_lea.vmem [#allocation16], %s1309_s1 }
 0x3ca   : > { %s1160_s23 = sshll.u32 %s523_s29, 4  ;;  %s2151_s23 = int_to_ptr.vmem [resolvable:$true] %s1160_s23 }
 0x3cb   : > { %s1730_s30 = scalar_lea.vmem %s2151_s23, 128  ;;  %p1737_p12 = scmp.lt.s32.totalorder %s2151_s23, %s1735_s14 }
 0x3cc   : > { %p1731_p0 = scmp.ne.s32.totalorder %s2151_s23, %s1730_s30  ;;  %p1738_p1 = scmp.lt.s32.totalorder %s1736_s2, %s1730_s30 }
 0x3ce   : > { %p1732_p7 = pnand %p1731_p0, %p2233_p6  ;;  %p1739_p2 = por %p1738_p1, %p1737_p12 }
 0x3d0   : > { %p1733_p9 = pneg %p1732_p7 }
 0x3d2   : > { %p1740_p8 = pnand %p1739_p2, %p1733_p9 }
 0x440   : > { %v767_v49 = vpop.xlane.xlu0 %766  ;;  %v770_v50 = vpop.xlane.xlu1 %769 }
 0x441   : > { %v777_v51 = vsub.f32 %v713_v39, %v767_v49  ;;  %v778_v52 = vsub.f32 %v759_v40, %v770_v50  ;;  %v772_v2 = vsub.f32 -inf, %v770_v50  ;;  %v771_v20 = vsub.f32 -inf, %v767_v49  ;;  %v1325_v50 = vld [vmem:[#allocation13] ss:$0 sm:$0xff] }
 0x443   : > { %v779_v53 = vmul.f32 1.442695, %v777_v51  ;;  %v781_v54 = vmul.f32 1.442695, %v778_v52  ;;  %v775_v3 = vmul.f32 1.442695, %v772_v2 }
 0x444   : > { %v638_v55 = vpop.permute.xlu1 %637  ;;  %v773_v21 = vmul.f32 1.442695, %v771_v20 }
 0x445   : > { %640 = vst.msk [vmem:[#allocation4] sm:$0xf] %vm627_vm2, %v638_v55  ;;  %1558 = vpow2.f32 %v779_v53  ;;  %v1553_v55 = vld [vmem:[%s2205_s9 + $0x10] sm:$0xff]  }
 0x446   : > { %1560 = vpow2.f32 %v781_v54  ;;  %v1552_v54 = vld [vmem:[%s2205_s9 + $0x18] sm:$0xff]  }
 0x447   : > { %1562 = vpow2.f32 %v775_v3 }
 0x44c   : > { %v670_v56 = vld [vmem:[#allocation4] sm:$0xf] }
 0x44d   : > { %v800_v57 = vsel %vm798_vm4, %v670_v56, 0  ;;  %v1554_v56 = vld [vmem:[%s2205_s9 + $0x8] sm:$0xff]  }
 0x44e   : > { %1384 = vmatpush3.bf16.msra.mxu1 %v800_v57  ;;  %v1555_v57 = vld [vmem:[%s2205_s9] sm:$0xff]  }
 0x44f   : > { %1395 = vmatprep.subr.bf16.mxu1 %v1832_v8 }
 0x452   : > { %v1559_v58 = vpop.eup %1558 }
 0x453   : > { %v785_v59 = vsel %vm672_vm3, %v1559_v58, 0.0  ;;  %v793_v60 = vpack.c.bf16 %v1559_v58, %v1559_v58  ;;  %v1561_v61 = vpop.eup %1560  ;;  %v1326_v58 = vld [vmem:[#allocation14] ss:$0 sm:$0xff] }
 0x454   : > { %786 = vadd.xlane.f32.xlu0 %v785_v59  ;;  %v788_v62 = vsel %vm672_vm3, %v1561_v61, 0.0  ;;  %v794_v63 = vpack.c.bf16 %v1561_v61, %v1561_v61  ;;  %v1563_v4 = vpop.eup %1562 }
 0x455   : > { %1386 = vmatmul.mubr.msk.bf16.vlgmr.msra.gmra.mxu1 %vm672_vm3, %v793_v60  ;;  %789 = vadd.xlane.f32.xlu1 %v788_v62  ;;  %v784_v6 = vmul.f32 0.0, %v1563_v4 }
 0x456   : > { %1397 = vmatprep.mubr.msk.bf16.mxu1 %vm1833_vm1, %v1832_v8  ;;  %1392 = vmatmul.mubr.msk.bf16.vlgmr.msra.gmra.mxu0 %vm672_vm3, %v794_v63 }
 0x457   : > { %1405 = vmatprep.mubr.msk.bf16.mxu0 %vm1833_vm1, %v1832_v8  ;;  %1396 = vmatpush3.bf16.msra.mxu1 %v1549_v1 }
 0x458   : > { %1409 = vmatprep.subr.bf16.mxu1 %v1832_v8 }
 0x4dd   : > { %v787_v23 = vpop.xlane.xlu0 %786 }
 0x4de   : > { %v790_v5 = vpop.xlane.xlu1 %789 }
 0x4df   : > { %v792_v7 = vadd.f32 %v790_v5, %v784_v6 }
 0x4e1   : > { %1564 = vrcp.f32 %v792_v7 }
 0x4e2   : > { %1566 = vpow2.f32 %v773_v21 }
 0x4ee   : > { %v1565_v13 = vpop.eup %1564 }
 0x4ef   : > { %v1567_v22 = vpop.eup %1566 }
 0x4f0   : > { %v783_v24 = vmul.f32 0.0, %v1567_v22 }
 0x4f2   : > { %v791_v25 = vadd.f32 %v787_v23, %v783_v24 }
 0x4f4   : > { %1568 = vrcp.f32 %v791_v25 }
 0x501   : > { %v1569_v27 = vpop.eup %1568 }
 0x515   : > { %v836_v9 = vpop.f32.mrf.mxu1 }
 0x516   : > { %v882_v10 = vpop.f32.mrf.mxu0  ;;  %v888_v26 = vadd.f32 %v836_v9, %v783_v24 }
 0x517   : > { %v1387_v11 = vpop.f32.mrf.mxu1  ;;  %v889_v12 = vadd.f32 %v882_v10, %v784_v6 }
 0x518   : > { %v1393_v14 = vpop.f32.mrf.mxu0  ;;  %v892_v28 = vmul.f32 %v1569_v27, %v888_v26  ;;  %v1330_v11 = vld [vmem:[%s2206_s10] ss:$0 sm:$0xff] }
 0x519   : > { %v839_v15 = vpop.f32.mrf.mxu1  ;;  %v893_v16 = vmul.f32 %v1565_v13, %v889_v12 }
 0x51a   : > { %v885_v17 = vpop.f32.mrf.mxu0 }
 0x51b   : > { %v1388_v18 = vpop.f32.mrf.mxu1  ;;  %895 = vrot.lane.b32.xlu0 %v893_v16, %s1839_s24 }
 0x51c   : > { %v1394_v19 = vpop.f32.mrf.mxu0 }
 0x58d   : > { %v896_v29 = vpop.permute.xlu0 %895 }
 0x58e   : > { %v898_v30 = vsel %vm672_vm3, %v892_v28, %v896_v29 }
 0x58f   : > { %v899_v31 = vpack.c.bf16 %v898_v30, %v898_v30 }
 0x591   : > { %1398 = vmatmul.mubr.msk.bf16.vlgmr.msra.gmra.mxu1 %vm908_vm5, %v899_v31 }
 0x592   : > { %1417 = vmatprep.mubr.msk.bf16.mxu1 %vm1833_vm1, %v1832_v8  ;;  %1410 = vmatpush3.bf16.msra.mxu1 %v1552_v54 }
 0x593   : > { %1411 = vmatprep.subr.bf16.mxu1 %v1832_v8 }
 0x596   : > { %1412 = vmatpush3.bf16.msra.mxu1 %v1553_v55 }
 0x597   : > { %1413 = vmatprep.subr.bf16.mxu1 %v1832_v8 }
 0x59a   : > { %1414 = vmatpush3.bf16.msra.mxu1 %v1554_v56 }
 0x59b   : > { %1415 = vmatprep.subr.bf16.mxu1 %v1832_v8 }
 0x59e   : > { %1416 = vmatpush3.bf16.msra.mxu1 %v1555_v57 }
 0x651   : > { %v946_v32 = vpop.f32.mrf.mxu1 }
 0x652   : > { %v2111_v33 = vadd.f32 %v946_v32, %v2053_v0  ;;  %v1550_v0 = vld [vmem:[%s2203_s7 + $0x8] sm:$0xff]  }
 0x653   : > { %v1399_v34 = vpop.f32.mrf.mxu1  ;;  %1402 = vmatpush3.bf16.msra.mxu0 %v1550_v0 }
 0x654   : > { %v955_v35 = vsel %vm536_vm0, %v2111_v33, 0.0  ;;  %1403 = vmatprep.subr.bf16.mxu0 %v1832_v8 }
 0x655   : > { %956 = vadd.xlane.f32.xlu0 %v955_v35  ;;  %v949_v36 = vpop.f32.mrf.mxu1 }
 0x657   : > { %v1400_v37 = vpop.f32.mrf.mxu1  ;;  %1404 = vmatpush3.bf16.msra.mxu0 %v1551_v43 }
 0x6de   : > { %v957_v38 = vpop.xlane.xlu0 %956 }
 0x6df   : > { %v959_v39 = vmul.f32 0.03125, %v957_v38 }
 0x6e1   : > { %v960_v40 = vsub.f32 %v2111_v33, %v959_v39 }
 0x6e3   : > { %v961_v41 = vmul.f32 %v960_v40, %v960_v40 }
 0x6e5   : > { %v962_v42 = vsel %vm536_vm0, %v961_v41, 0.0 }
 0x6e6   : > { %963 = vadd.xlane.f32.xlu1 %v962_v42 }
 0x76f   : > { %v964_v44 = vpop.xlane.xlu1 %963 }
 0x770   : > { %v965_v45 = vmul.f32 0.03125, %v964_v44 }
 0x772   : > { %v966_v46 = vadd.f32 1e-05, %v965_v45 }
 0x774   : > { %1570 = vrsqrt.f32 %v966_v46 }
 0x781   : > { %v1571_v47 = vpop.eup %1570 }
 0x782   : > { %v968_v49 = vmul.f32 %v1571_v47, %v960_v40 }
 0x784   : > { %v975_v51 = vmul.f32 %v1324_v48, %v968_v49 }
 0x786   : > { %v982_v52 = vadd.f32 %v1325_v50, %v975_v51 }
 0x788   : > { %v983_v53 = vpack.c.bf16 %v982_v52, %v982_v52 }
 0x78a   : > { %1406 = vmatmul.mubr.msk.bf16.vlgmr.msra.gmra.mxu0 %vm536_vm0, %v983_v53 }
 0x84a   : > { %v1044_v59 = vpop.f32.mrf.mxu0 }
 0x84b   : > { %v1045_v60 = vadd.f32 %v1326_v58, %v1044_v59 }
 0x84c   : > { %v1407_v61 = vpop.f32.mrf.mxu0 }
 0x84d   : > { %v1051_v62 = vmul.f32 0.044715, %v1045_v60  ;;  %v1050_v7 = vmul.f32 0.5, %v1045_v60 }
 0x84e   : > { %v1047_v63 = vpop.f32.mrf.mxu0 }
 0x84f   : > { %v1052_v1 = vmul.f32 %v1051_v62, %v1045_v60 }
 0x850   : > { %v1408_v2 = vpop.f32.mrf.mxu0 }
 0x851   : > { %v1053_v3 = vmul.f32 %v1052_v1, %v1045_v60 }
 0x853   : > { %v1054_v4 = vadd.f32 %v1053_v3, %v1045_v60 }
 0x855   : > { %v1055_v5 = vmul.f32 0.7978846, %v1054_v4 }
 0x857   : > { %1572 = vtanh.f32 %v1055_v5 }
 0x864   : > { %v1573_v6 = vpop.eup %1572 }
 0x865   : > { %v1057_v9 = vadd.f32 1.0, %v1573_v6 }
 0x867   : > { %v1058_v10 = vmul.f32 %v1057_v9, %v1050_v7 }
 0x869   : > { %v1059_v8 = vpack.c.bf16 %v1058_v10, %v1058_v10 }
 0x86b   : > { %1418 = vmatmul.mubr.msk.bf16.vlgmr.msra.gmra.mxu1 %vm1099_vm6, %v1059_v8 }
 0x92b   : > { %v1137_v12 = vpop.f32.mrf.mxu1 }
 0x92c   : > { %v1138_v13 = vadd.f32 %v1330_v11, %v1137_v12 }
 0x92d   : > { %v1419_v14 = vpop.f32.mrf.mxu1 }
 0x92e   : > { %v1143_v15 = vadd.f32 %v1138_v13, %v2111_v33 }
 0x92f   : > { %v1140_v16 = vpop.f32.mrf.mxu1 }
 0x930   : > { %1144 = vst.msk [vmem:[%s523_s29] sm:$0xff] %vm536_vm0, %v1143_v15 }
 0x931   : > { %v1420_v17 = vpop.f32.mrf.mxu1 }
 0x932   : > { %1743 = shalt.err (!%p1740_p8)
}
 0x933   : > { %s1744_s27 = scalar_lea.hbm %s2149_s19, 128  ;;  %s1748_s24 = scalar_lea.hbm %s2209_s13, 256 }
 0x934   : > { %p1745_p3 = scmp.ne.s32.totalorder %s2149_s19, %s1744_s27  ;;  %p1749_p10 = scmp.lt.s32.totalorder %s2149_s19, %s2209_s13 }
 0x935   : > { %p1750_p11 = scmp.lt.s32.totalorder %s1748_s24, %s1744_s27 }
 0x936   : > { %p1746_p5 = pnand %p1745_p3, %p2233_p6 }
 0x937   : > { %p1751_p13 = por %p1750_p11, %p1749_p10 }
 0x938   : > { %p1747_p4 = pneg %p1746_p5 }
 0x93a   : > { %p1752_p0 = pnand %p1751_p13, %p1747_p4 }
 0x93c   : > { %1755 = shalt.err (!%p1752_p0)
}
 0x93d   : > { %1445 = dma.vmem_to_hbm [thread:$0]  (%p2233_p6), %s2151_s23, 128, %s2149_s19, %s1146_s28  }
 0x93e PF: > { %p1482_p7 = scmp.ge.s32.totalorder %s1822_s12, 2  ;;  %s1172_s29 = sand.u32 1, %s1802_s25  }
 0x93f   : > { %p2234_p9 = scmp.ne.s32.totalorder %s2223_s18, 0  ;;  %s1173_s11 = scalar_lea.sflag [#allocation7], %s1172_s29 }
 0x941   : > { %p1467_p12 = pnand %p1482_p7, %p2234_p9 }
 0x943   : > { %p1468_p1 = pneg %p1467_p12 }
 0x945   : > { %1797 = dma.done.wait (%p1468_p1), %s1173_s11, 128  }
 0x946   : > { %1799 = vsyncadd (%p1468_p1), %s1173_s11, 4294967168  ;;  %s30_s12 = sadd.s32 1, %s1822_s12   ;;  %s2235_s16 = sld [smem:[#allocation22_spill]] }
 0x947   : > { %p27_p2 = scmp.ge.s32.totalorder %s30_s12, 4   ;;  %s2236_s27 = sld [smem:[#allocation25_spill]] }
 0x948   : > { %s2237_s28 = sld [smem:[#allocation23_spill]]  ;;  %s2239_s25 = smov %s1806_s26 }
 0x949   : > { %s2238_s11 = sld [smem:[#allocation24_spill]]  ;;  %29 = sbr.rel (!%p27_p2) target bundleno = 11 (0xb), region = 141 }
 0x94c   : > { %s2240_s26 = smov %s2235_s16 }
 0x94e   :  { %1178 = vsyncpa [#allocation6], 1 }
 0x94f   :  { %1180 = vsyncpa [#allocation6 + $0x1], 1 }
 0x950   :  { %1181 = vsyncpa [#allocation9], 1 }
 0x951   :  { %1182 = vsyncpa [#allocation12], 1 }
 0x952   :  { %1183 = vsyncpa [#allocation15], 1 }
 0x953   :  { %1184 = vsyncpa [#allocation7], 1 }
 0x954   :  { %1186 = vsyncpa [#allocation7 + $0x1], 1 }

</bundles_post_ra>
